<compile_context>
chip_gen: v6e
topology: v6e:2x2x1
jax: 0.10.0
libtpu: 0.0.40
codegen_flags: <defaults>
</compile_context>

<pallas_src>
import jax
import jax.numpy as jnp
from jax.experimental import pallas as pl
from jax.experimental.pallas import tpu as pltpu

STATE_DIM = 16
ACTION_DIM = 8
HIDDEN = 512
BATCH = 16
OUT_PAD = 128  # lane-dense padded output width; real q value lives in column 0


def softq_kernel(s_ref, a_ref, w1s_ref, w1a_ref, b1_ref, w2_ref, b2_ref,
                 w3_ref, b3_ref, w4_ref, b4_ref, out_ref):
    # Layer 1: concat(state, action) @ W1  ==  state @ W1s + action @ W1a.
    h = jnp.dot(s_ref[...].astype(jnp.bfloat16), w1s_ref[...],
                preferred_element_type=jnp.float32)
    h = h + jnp.dot(a_ref[...].astype(jnp.bfloat16), w1a_ref[...],
                    preferred_element_type=jnp.float32)
    h = jnp.maximum(h + b1_ref[...], 0.0)

    # Layers 2-3: bf16 MXU matmuls, f32 accumulation, f32 bias + ReLU.
    h = jnp.maximum(
        jnp.dot(h.astype(jnp.bfloat16), w2_ref[...],
                preferred_element_type=jnp.float32) + b2_ref[...], 0.0)
    h = jnp.maximum(
        jnp.dot(h.astype(jnp.bfloat16), w3_ref[...],
                preferred_element_type=jnp.float32) + b3_ref[...], 0.0)

    # Layer 4: W4/b4 padded to 128 output lanes (zeros beyond column 0) so the
    # output store is lane-dense / unmasked.
    q = jnp.dot(h.astype(jnp.bfloat16), w4_ref[...],
                preferred_element_type=jnp.float32) + b4_ref[...]
    out_ref[...] = q


def softq_forward(state, action, params):
    """Pallas forward for softQNet. Returns q_val of shape [B, 1] (f32)."""
    w1s, w1a, b1, w2, b2, w3, b3, w4p, b4p = params
    B = state.shape[0]

    vmem = pl.BlockSpec(memory_space=pltpu.MemorySpace.VMEM)

    out_padded = pl.pallas_call(
        softq_kernel,
        out_shape=jax.ShapeDtypeStruct((B, OUT_PAD), jnp.float32),
        in_specs=[vmem] * 11,
        out_specs=vmem,
    )(state, action, w1s, w1a, b1, w2, b2, w3, b3, w4p, b4p)

    # Slice the real q column out of the lane-dense padded slab (cheap XLA op).
    return out_padded[:, :1]


def init_params(key, state_dim, action_dim):
    """Deterministic PyTorch-style (uniform +-1/sqrt(fan_in)) Linear init, f32."""
    dims = [(state_dim + action_dim, HIDDEN),
            (HIDDEN, HIDDEN),
            (HIDDEN, HIDDEN),
            (HIDDEN, 1)]
    raw = []
    for (fan_in, fan_out) in dims:
        key, kw, kb = jax.random.split(key, 3)
        bound = 1.0 / jnp.sqrt(jnp.float32(fan_in))
        w = jax.random.uniform(kw, (fan_in, fan_out), jnp.float32, -bound, bound)
        b = jax.random.uniform(kb, (1, fan_out), jnp.float32, -bound, bound)
        raw.extend([w, b])
    return tuple(raw)


def pack_params(raw):
    """Split W1 (avoid concat), cast weights to bf16, pad layer 4 to 128 lanes."""
    w1, b1, w2, b2, w3, b3, w4, b4 = raw
    w1s = w1[:STATE_DIM].astype(jnp.bfloat16)
    w1a = w1[STATE_DIM:].astype(jnp.bfloat16)
    w4p = jnp.zeros((HIDDEN, OUT_PAD), jnp.float32).at[:, :1].set(w4)
    w4p = w4p.astype(jnp.bfloat16)
    b4p = jnp.zeros((1, OUT_PAD), jnp.float32).at[:, :1].set(b4)
    return (w1s, w1a, b1,
            w2.astype(jnp.bfloat16), b2,
            w3.astype(jnp.bfloat16), b3,
            w4p, b4p)


def softq_reference(state, action, raw):
    """Pure-JAX reference; emulates the kernel's bf16 weight storage."""
    w1, b1, w2, b2, w3, b3, w4, b4 = raw
    bf = lambda w: w.astype(jnp.bfloat16).astype(jnp.float32)
    x = jnp.concatenate([state, action], axis=1)
    x = jnp.maximum(x @ bf(w1) + b1, 0.0)
    x = jnp.maximum(x @ bf(w2) + b2, 0.0)
    x = jnp.maximum(x @ bf(w3) + b3, 0.0)
    return x @ bf(w4) + b4


if __name__ == "__main__":
    key = jax.random.PRNGKey(0)
    kp, ks, ka = jax.random.split(key, 3)

    raw = init_params(kp, STATE_DIM, ACTION_DIM)
    params = pack_params(raw)
    state = jax.random.normal(ks, (BATCH, STATE_DIM), jnp.float32)
    action = jax.random.normal(ka, (BATCH, ACTION_DIM), jnp.float32)

    q_val = jax.block_until_ready(softq_forward(state, action, params))
    q_ref = softq_reference(state, action, raw)

    assert q_val.shape == (BATCH, 1)
    max_err = float(jnp.max(jnp.abs(q_val - q_ref)))
    assert jnp.allclose(q_val, q_ref, atol=2e-2, rtol=2e-2), max_err

    print("KERNEL_OK")
</pallas_src>

<mosaic_0001>
module attributes {stable_mosaic.version = 11 : i64} {
  func.func @softq_kernel(%arg0: memref<16x16xf32, #tpu.memory_space<vmem>>, %arg1: memref<16x8xf32, #tpu.memory_space<vmem>>, %arg2: memref<16x512xbf16, #tpu.memory_space<vmem>>, %arg3: memref<8x512xbf16, #tpu.memory_space<vmem>>, %arg4: memref<1x512xf32, #tpu.memory_space<vmem>>, %arg5: memref<512x512xbf16, #tpu.memory_space<vmem>>, %arg6: memref<1x512xf32, #tpu.memory_space<vmem>>, %arg7: memref<512x512xbf16, #tpu.memory_space<vmem>>, %arg8: memref<1x512xf32, #tpu.memory_space<vmem>>, %arg9: memref<512x128xbf16, #tpu.memory_space<vmem>>, %arg10: memref<1x128xf32, #tpu.memory_space<vmem>>, %arg11: memref<16x128xf32, #tpu.memory_space<vmem>>) attributes {dimension_semantics = [], scalar_prefetch = 0 : i64, scratch_operands = 0 : i64, tpu.core_type = #tpu.core_type<tc>} {
    %c0 = arith.constant 0 : index
    %c0_0 = arith.constant 0 : index
    %0 = vector.load %arg0[%c0, %c0_0] : memref<16x16xf32, #tpu.memory_space<vmem>>, vector<16x16xf32>
    %1 = arith.truncf %0 : vector<16x16xf32> to vector<16x16xbf16>
    %c0_1 = arith.constant 0 : index
    %c0_2 = arith.constant 0 : index
    %2 = vector.load %arg2[%c0_1, %c0_2] : memref<16x512xbf16, #tpu.memory_space<vmem>>, vector<16x512xbf16>
    %cst = arith.constant dense<0.000000e+00> : vector<16x512xf32>
    %3 = tpu.matmul %1, %2, %cst {dimension_numbers = #tpu.dot_dimension_numbers<[1], [0], [0], [1], [0, 0, 1, 1], [], []>} : vector<16x16xbf16>, vector<16x512xbf16>, vector<16x512xf32> -> vector<16x512xf32>
    %c0_3 = arith.constant 0 : index
    %c0_4 = arith.constant 0 : index
    %4 = vector.load %arg1[%c0_3, %c0_4] : memref<16x8xf32, #tpu.memory_space<vmem>>, vector<16x8xf32>
    %5 = arith.truncf %4 : vector<16x8xf32> to vector<16x8xbf16>
    %c0_5 = arith.constant 0 : index
    %c0_6 = arith.constant 0 : index
    %6 = vector.load %arg3[%c0_5, %c0_6] : memref<8x512xbf16, #tpu.memory_space<vmem>>, vector<8x512xbf16>
    %cst_7 = arith.constant dense<0.000000e+00> : vector<16x512xf32>
    %7 = tpu.matmul %5, %6, %cst_7 {dimension_numbers = #tpu.dot_dimension_numbers<[1], [0], [0], [1], [0, 0, 1, 1], [], []>} : vector<16x8xbf16>, vector<8x512xbf16>, vector<16x512xf32> -> vector<16x512xf32>
    %8 = arith.addf %3, %7 : vector<16x512xf32>
    %c0_8 = arith.constant 0 : index
    %c0_9 = arith.constant 0 : index
    %9 = vector.load %arg4[%c0_8, %c0_9] : memref<1x512xf32, #tpu.memory_space<vmem>>, vector<1x512xf32>
    %10 = vector.broadcast %9 : vector<1x512xf32> to vector<16x512xf32>
    %11 = arith.addf %8, %10 : vector<16x512xf32>
    %cst_10 = arith.constant 0.000000e+00 : f32
    %12 = vector.broadcast %cst_10 : f32 to vector<16x512xf32>
    %13 = arith.maximumf %11, %12 : vector<16x512xf32>
    %14 = arith.truncf %13 : vector<16x512xf32> to vector<16x512xbf16>
    %c0_11 = arith.constant 0 : index
    %c0_12 = arith.constant 0 : index
    %15 = vector.load %arg5[%c0_11, %c0_12] : memref<512x512xbf16, #tpu.memory_space<vmem>>, vector<512x512xbf16>
    %cst_13 = arith.constant dense<0.000000e+00> : vector<16x512xf32>
    %16 = tpu.matmul %14, %15, %cst_13 {dimension_numbers = #tpu.dot_dimension_numbers<[1], [0], [0], [1], [0, 0, 1, 1], [], []>} : vector<16x512xbf16>, vector<512x512xbf16>, vector<16x512xf32> -> vector<16x512xf32>
    %c0_14 = arith.constant 0 : index
    %c0_15 = arith.constant 0 : index
    %17 = vector.load %arg6[%c0_14, %c0_15] : memref<1x512xf32, #tpu.memory_space<vmem>>, vector<1x512xf32>
    %18 = vector.broadcast %17 : vector<1x512xf32> to vector<16x512xf32>
    %19 = arith.addf %16, %18 : vector<16x512xf32>
    %cst_16 = arith.constant 0.000000e+00 : f32
    %20 = vector.broadcast %cst_16 : f32 to vector<16x512xf32>
    %21 = arith.maximumf %19, %20 : vector<16x512xf32>
    %22 = arith.truncf %21 : vector<16x512xf32> to vector<16x512xbf16>
    %c0_17 = arith.constant 0 : index
    %c0_18 = arith.constant 0 : index
    %23 = vector.load %arg7[%c0_17, %c0_18] : memref<512x512xbf16, #tpu.memory_space<vmem>>, vector<512x512xbf16>
    %cst_19 = arith.constant dense<0.000000e+00> : vector<16x512xf32>
    %24 = tpu.matmul %22, %23, %cst_19 {dimension_numbers = #tpu.dot_dimension_numbers<[1], [0], [0], [1], [0, 0, 1, 1], [], []>} : vector<16x512xbf16>, vector<512x512xbf16>, vector<16x512xf32> -> vector<16x512xf32>
    %c0_20 = arith.constant 0 : index
    %c0_21 = arith.constant 0 : index
    %25 = vector.load %arg8[%c0_20, %c0_21] : memref<1x512xf32, #tpu.memory_space<vmem>>, vector<1x512xf32>
    %26 = vector.broadcast %25 : vector<1x512xf32> to vector<16x512xf32>
    %27 = arith.addf %24, %26 : vector<16x512xf32>
    %cst_22 = arith.constant 0.000000e+00 : f32
    %28 = vector.broadcast %cst_22 : f32 to vector<16x512xf32>
    %29 = arith.maximumf %27, %28 : vector<16x512xf32>
    %30 = arith.truncf %29 : vector<16x512xf32> to vector<16x512xbf16>
    %c0_23 = arith.constant 0 : index
    %c0_24 = arith.constant 0 : index
    %31 = vector.load %arg9[%c0_23, %c0_24] : memref<512x128xbf16, #tpu.memory_space<vmem>>, vector<512x128xbf16>
    %cst_25 = arith.constant dense<0.000000e+00> : vector<16x128xf32>
    %32 = tpu.matmul %30, %31, %cst_25 {dimension_numbers = #tpu.dot_dimension_numbers<[1], [0], [0], [1], [0, 0, 1, 1], [], []>} : vector<16x512xbf16>, vector<512x128xbf16>, vector<16x128xf32> -> vector<16x128xf32>
    %c0_26 = arith.constant 0 : index
    %c0_27 = arith.constant 0 : index
    %33 = vector.load %arg10[%c0_26, %c0_27] : memref<1x128xf32, #tpu.memory_space<vmem>>, vector<1x128xf32>
    %34 = vector.broadcast %33 : vector<1x128xf32> to vector<16x128xf32>
    %35 = arith.addf %32, %34 : vector<16x128xf32>
    %c0_28 = arith.constant 0 : index
    %c0_29 = arith.constant 0 : index
    %36 = vector.load %arg11[%c0_28, %c0_29] : memref<16x128xf32, #tpu.memory_space<vmem>>, vector<16x128xf32>
    tpu.vector_store %arg11[%c0_28, %c0_29], %35 {strides = array<i32>} : memref<16x128xf32, #tpu.memory_space<vmem>>, vector<16x128xf32>,
    return
  }
}

</mosaic_0001>

<bundles_post_ra>
// kernel: tpu_custom_call.1
= control target key start
LH: loop header
LB: loop body
LE: loop exit
PB: predicated region body
PF: predicated region fallthrough
CT: control target
= control target key end

     0   :  { %16 = vsyncpa [#allocation3], 0  ;;  %s3768_s0 = inlined_call_operand.vmem [shape: f32[16,16], index: 0, kind: input, shape index: {}]   ;;  %s3769_s1 = inlined_call_operand.vmem [shape: f32[16,8], index: 1, kind: input, shape index: {}]   ;;  %s3770_s2 = inlined_call_operand.hbm [shape: bf16[16,512], index: 2, kind: input, shape index: {}]   ;;  %s3771_s3 = inlined_call_operand.hbm [shape: bf16[8,512], index: 3, kind: input, shape index: {}]   ;;  %s3772_s4 = inlined_call_operand.vmem [shape: f32[1,512], index: 4, kind: input, shape index: {}]   ;;  %s3773_s5 = inlined_call_operand.hbm [shape: bf16[512,512], index: 5, kind: input, shape index: {}]   ;;  %s3774_s6 = inlined_call_operand.vmem [shape: f32[1,512], index: 6, kind: input, shape index: {}]   ;;  %s3775_s7 = inlined_call_operand.hbm [shape: bf16[512,512], index: 7, kind: input, shape index: {}]   ;;  %s3776_s8 = inlined_call_operand.vmem [shape: f32[1,512], index: 8, kind: input, shape index: {}]   ;;  %s3777_s9 = inlined_call_operand.hbm [shape: bf16[512,128], index: 9, kind: input, shape index: {}]   ;;  %s3778_s10 = inlined_call_operand.vmem [shape: f32[1,128], index: 10, kind: input, shape index: {}]   ;;  %s3779_s11 = inlined_call_operand.hbm [shape: f32[16,128], index: 11, kind: output, shape index: {}]  }
   0x1   :  { %17 = vsyncpa [#allocation6], 0 }
   0x2   :  { %18 = vsyncpa [#allocation9], 0 }
   0x3   :  { %19 = vsyncpa [#allocation4], 0  ;;  %s3611_s17 = smov [#allocation5]  }
   0x4   :  { %s42_s18 = sshll.u32 %s3611_s17, 4  ;;  %s43_s18 = int_to_ptr.vmem [resolvable:$true] %s42_s18 }
   0x5   :  { %s3491_s19 = scalar_lea.vmem %s43_s18, 256  ;;  %p3496_p1 = scmp.lt.s32.totalorder %s43_s18, %s43_s18 }
   0x6   :  { %p3492_p0 = scmp.ne.s32.totalorder %s43_s18, %s3491_s19  ;;  %p3497_p2 = scmp.lt.s32.totalorder %s3491_s19, %s3491_s19 }
   0x8   :  { %p3498_p3 = por %p3497_p2, %p3496_p1 }
   0xa   :  { %p3499_p4 = pnand %p3498_p3, %p3492_p0 }
   0xc   :  { %3502 = shalt.err (!%p3499_p4)
}
   0xd   :  { %45 = dma.hbm_to_vmem [thread:$0]  %s3771_s3, 256, %s43_s18, [#allocation6]  }
   0xe   :  { %s3612_s22 = smov [#allocation8]   ;;  %s3613_s24 = smov [#allocation2]  }
   0xf   :  { %s67_s23 = sshll.u32 %s3612_s22, 4  ;;  %s29_s25 = sshll.u32 %s3613_s24, 4  ;;  %s68_s23 = int_to_ptr.vmem [resolvable:$true] %s67_s23  ;;  %s30_s25 = int_to_ptr.vmem [resolvable:$true] %s29_s25 }
  0x10   :  { %s3511_s26 = scalar_lea.vmem %s68_s23, 16384  ;;  %p3516_p6 = scmp.lt.s32.totalorder %s68_s23, %s68_s23 }
  0x11   :  { %p3512_p5 = scmp.ne.s32.totalorder %s68_s23, %s3511_s26  ;;  %p3517_p7 = scmp.lt.s32.totalorder %s3511_s26, %s3511_s26 }
  0x13   :  { %p3518_p8 = por %p3517_p7, %p3516_p6 }
  0x15   :  { %p3519_p9 = pnand %p3518_p8, %p3512_p5 }
  0x17   :  { %3522 = shalt.err (!%p3519_p9)
}
  0x18   :  { %s3614_s27 = smov 256   ;;  %s3615_s28 = smov 16  }
  0x19   :  { %73 = dma.hbm_to_vmem [thread:$0]  %s3775_s7, 16384, %s68_s23, [#allocation9], %s3614_s27, %s3614_s27, %s3615_s28  }
  0x1a   :  { %s3531_s3 = scalar_lea.vmem %s30_s25, 512  ;;  %p3536_p11 = scmp.lt.s32.totalorder %s30_s25, %s30_s25 }
  0x1b   :  { %p3532_p10 = scmp.ne.s32.totalorder %s30_s25, %s3531_s3  ;;  %p3537_p12 = scmp.lt.s32.totalorder %s3531_s3, %s3531_s3 }
  0x1d   :  { %p3538_p13 = por %p3537_p12, %p3536_p11 }
  0x1f   :  { %p3539_p0 = pnand %p3538_p13, %p3532_p10 }
  0x21   :  { %3542 = shalt.err (!%p3539_p0)
}
  0x22   :  { %35 = dma.hbm_to_vmem [thread:$0]  %s3770_s2, 512, %s30_s25, [#allocation3], %s3614_s27, %s3614_s27, %s3615_s28  }
  0x23   :  { %s3616_s14 = smov [#allocation7]   ;;  %s3617_s16 = smov [#allocation10]  }
  0x24   :  { %s53_s15 = sshll.u32 %s3616_s14, 4  ;;  %s81_s17 = sshll.u32 %s3617_s16, 4  ;;  %s54_s15 = int_to_ptr.vmem [resolvable:$true] %s53_s15  ;;  %s82_s17 = int_to_ptr.vmem [resolvable:$true] %s81_s17 }
  0x25   :  { %s3551_s18 = scalar_lea.vmem %s54_s15, 16384  ;;  %p3556_p2 = scmp.lt.s32.totalorder %s54_s15, %s54_s15 }
  0x26   :  { %p3552_p1 = scmp.ne.s32.totalorder %s54_s15, %s3551_s18  ;;  %p3557_p3 = scmp.lt.s32.totalorder %s3551_s18, %s3551_s18 }
  0x28   :  { %p3558_p4 = por %p3557_p3, %p3556_p2 }
  0x2a   :  { %p3559_p5 = pnand %p3558_p4, %p3552_p1 }
  0x2c   :  { %3562 = shalt.err (!%p3559_p5)
}
  0x2d   :  { %59 = dma.hbm_to_vmem [thread:$0]  %s3773_s5, 16384, %s54_s15, [#allocation6], %s3614_s27, %s3614_s27, %s3615_s28  }
  0x2e   :  { %s3571_s20 = scalar_lea.vmem %s82_s17, 4096  ;;  %p3576_p7 = scmp.lt.s32.totalorder %s82_s17, %s82_s17 }
  0x2f   :  { %p3572_p6 = scmp.ne.s32.totalorder %s82_s17, %s3571_s20  ;;  %p3577_p8 = scmp.lt.s32.totalorder %s3571_s20, %s3571_s20 }
  0x31   :  { %p3578_p9 = por %p3577_p8, %p3576_p7 }
  0x33   :  { %p3579_p10 = pnand %p3578_p9, %p3572_p6 }
  0x35   :  { %3582 = shalt.err (!%p3579_p10)
}
  0x36   :  { %s3618_s2 = smov 64   ;;  %s3619_s21 = smov 4  }
  0x37   :  { %87 = dma.hbm_to_vmem [thread:$0]  %s3777_s9, 4096, %s82_s17, [#allocation9], %s3618_s2, %s3618_s2, %s3619_s21  }
  0x38   :  { %3603 = dma.done.wait [#allocation3], 512  }
  0x39   :  { %3604 = vsyncadd [#allocation3], 4294966784 }
  0x3a   :  { %3605 = dma.done.wait [#allocation6], 16640  }
  0x3b   :  { %3606 = vsyncadd [#allocation6], 4294950656 }
  0x3c   :  { %3607 = dma.done.wait [#allocation9], 20480  }
  0x3d   :  { %3608 = vsyncadd [#allocation9], 4294946816  ;;  %v3620_v0 = vmov 0   ;;  %v116_v1 = vld [vmem:[#allocation5] sm:$0xff]  ;;  %vm132_vm0 = vcmask 1043456   ;;  %v117_v2 = vld [vmem:[#allocation5 + $0x8] sm:$0xff] }
  0x3e   :  { %177 = vmatprep.mubr.bf16.mxu0 %v3620_v0  ;;  %220 = vmatprep.mubr.bf16.mxu1 %v3620_v0  ;;  %v113_v3 = vld [vmem:[%s3769_s1] sm:$0xff]  ;;  %v2698_v4 = vcombine.high %v116_v1, %v116_v1  ;;  %v2700_v5 = vcombine.high %v117_v2, %v117_v2  ;;  %v2697_v6 = vcombine.low %v116_v1, %v116_v1  ;;  %v114_v8 = vld [vmem:[%s3769_s1 + $0x8] sm:$0xff]  ;;  %vm128_vm1 = vcmask 64512   ;;  %s3621_s13 = smov [#allocation11]  }
  0x3f   :  { %v2699_v7 = vcombine.low %v117_v2, %v117_v2  ;;  %v3063_v9 = vld [vmem:[#allocation2 + $0x4] ss:$16 sps:$4 sm:$0xff]   ;;  %v115_v12 = vpack.c.bf16 %v114_v8, %v113_v3  ;;  %v3061_v13 = vld [vmem:[#allocation2] ss:$16 sps:$4 sm:$0xff]   ;;  %v3064_v14 = vld [vmem:[#allocation2 + $0x8] ss:$16 sps:$4 sm:$0xff]  }
  0x40   :  { %2701 = vmatprep.subr.msk.bf16.mxu0 %vm132_vm0, %v2698_v4  ;;  %2703 = vmatprep.subr.msk.bf16.mxu1 %vm132_vm0, %v2700_v5  ;;  %v134_v10 = vsel %vm132_vm0, %v2697_v6, 0  ;;  %v3066_v15 = vld [vmem:[#allocation2 + $0xc] ss:$16 sps:$4 sm:$0xff]   ;;  %v3069_v16 = vld [vmem:[#allocation7 + $0xe4] ss:$16 sps:$4 sm:$0xff]   ;;  %vm251_vm2 = vcmask 130048  }
  0x41   :  { %v140_v11 = vsel %vm132_vm0, %v2699_v7, 0  ;;  %160 = vmatpush1.bf16.msra.mxu0 %v134_v10  ;;  %v3072_v17 = vld [vmem:[#allocation7 + $0x2e4] ss:$16 sps:$4 sm:$0xff]   ;;  %v107_v19 = vld [vmem:[%s3768_s0 + $0x8] sm:$0xff]  ;;  %v3067_v21 = vld [vmem:[#allocation7 + $0xe0] ss:$16 sps:$4 sm:$0xff]  }
  0x42   :  { %203 = vmatpush1.bf16.msra.mxu1 %v140_v11  ;;  %269 = vmatprep.subr.bf16.mxu0 %v3063_v9  ;;  %v106_v18 = vld [vmem:[%s3768_s0] sm:$0xff]  ;;  %s2683_s14 = sshll.u32 %s3621_s13, 4  ;;  %s2684_s14 = int_to_ptr.vmem [resolvable:$true] %s2683_s14 }
  0x43   :  { %312 = vmatprep.subr.bf16.mxu1 %v3066_v15  ;;  %v108_v20 = vpack.c.bf16 %v107_v19, %v106_v18  ;;  %v3070_v22 = vld [vmem:[#allocation7 + $0x2e0] ss:$16 sps:$4 sm:$0xff]   ;;  %v3075_v23 = vld [vmem:[#allocation7 + $0xc4] ss:$16 sps:$4 sm:$0xff]   ;;  %v3165_v19 = vld [vmem:[#allocation7 + $0xec] ss:$16 sps:$4 sm:$0xff]   ;;  %p3588_p12 = scmp.lt.s32.totalorder %s2684_s14, %s2684_s14 }
  0x44   :  { %2702 = vmatmul.mubr.msk.bf16.vlgmr.msra.gmra.mxu0 %vm128_vm1, %v115_v12  ;;  %v3078_v24 = vld [vmem:[#allocation7 + $0x2c4] ss:$16 sps:$4 sm:$0xff]   ;;  %v3073_v25 = vld [vmem:[#allocation7 + $0xc0] ss:$16 sps:$4 sm:$0xff]   ;;  %s3583_s15 = scalar_lea.vmem %s2684_s14, 256 }
  0x45   :  { %2704 = vmatmul.mubr.msk.bf16.vlgmr.msra.gmra.mxu1 %vm128_vm1, %v115_v12  ;;  %270 = vmatpush1.bf16.msra.mxu0 %v3061_v13  ;;  %v3076_v26 = vld [vmem:[#allocation7 + $0x2c0] ss:$16 sps:$4 sm:$0xff]   ;;  %v3081_v27 = vld [vmem:[#allocation7 + $0xa4] ss:$16 sps:$4 sm:$0xff]   ;;  %p3584_p11 = scmp.ne.s32.totalorder %s2684_s14, %s3583_s15  ;;  %p3589_p13 = scmp.lt.s32.totalorder %s3583_s15, %s3583_s15 }
  0x46   :  { %313 = vmatpush1.bf16.msra.mxu1 %v3064_v14  ;;  %287 = vmatprep.mubr.bf16.mxu0 %v3620_v0  ;;  %v3084_v28 = vld [vmem:[#allocation7 + $0x2a4] ss:$16 sps:$4 sm:$0xff]   ;;  %v3079_v29 = vld [vmem:[#allocation7 + $0xa0] ss:$16 sps:$4 sm:$0xff]  }
  0x47   :  { %330 = vmatprep.mubr.bf16.mxu1 %v3620_v0  ;;  %1173 = vmatprep.subr.bf16.mxu0 %v3069_v16  ;;  %v3082_v30 = vld [vmem:[#allocation7 + $0x2a0] ss:$16 sps:$4 sm:$0xff]   ;;  %v3087_v31 = vld [vmem:[#allocation7 + $0x84] ss:$16 sps:$4 sm:$0xff]   ;;  %p3590_p0 = por %p3589_p13, %p3588_p12 }
  0x48   :  { %1216 = vmatprep.subr.bf16.mxu1 %v3072_v17  ;;  %v3090_v32 = vld [vmem:[#allocation7 + $0x284] ss:$16 sps:$4 sm:$0xff]   ;;  %v3085_v33 = vld [vmem:[#allocation7 + $0x80] ss:$16 sps:$4 sm:$0xff]  }
  0x49   :  { %v3088_v34 = vld [vmem:[#allocation7 + $0x280] ss:$16 sps:$4 sm:$0xff]   ;;  %v3093_v35 = vld [vmem:[#allocation7 + $0x64] ss:$16 sps:$4 sm:$0xff]   ;;  %p3591_p1 = pnand %p3590_p0, %p3584_p11 }
  0x4a   :  { %v3096_v36 = vld [vmem:[#allocation7 + $0x264] ss:$16 sps:$4 sm:$0xff]   ;;  %v3091_v37 = vld [vmem:[#allocation7 + $0x60] ss:$16 sps:$4 sm:$0xff]  }
  0x4b   :  { %v3094_v38 = vld [vmem:[#allocation7 + $0x260] ss:$16 sps:$4 sm:$0xff]   ;;  %v3099_v39 = vld [vmem:[#allocation7 + $0x44] ss:$16 sps:$4 sm:$0xff]  }
  0x4c   :  { %2709 = vmatmul.mubr.msk.bf16.vlgmr.msra.gmra.mxu0 %vm251_vm2, %v108_v20  ;;  %v3102_v40 = vld [vmem:[#allocation7 + $0x244] ss:$16 sps:$4 sm:$0xff]   ;;  %v3097_v41 = vld [vmem:[#allocation7 + $0x40] ss:$16 sps:$4 sm:$0xff]  }
  0x4d   :  { %2710 = vmatmul.mubr.msk.bf16.vlgmr.msra.gmra.mxu1 %vm251_vm2, %v108_v20  ;;  %1174 = vmatpush1.bf16.msra.mxu0 %v3067_v21  ;;  %v3100_v42 = vld [vmem:[#allocation7 + $0x240] ss:$16 sps:$4 sm:$0xff]   ;;  %v3105_v43 = vld [vmem:[#allocation7 + $0x24] ss:$16 sps:$4 sm:$0xff]   ;;  %v3168_v20 = vld [vmem:[#allocation7 + $0x2ec] ss:$16 sps:$4 sm:$0xff]  }
  0x4e   :  { %1217 = vmatpush1.bf16.msra.mxu1 %v3070_v22  ;;  %1175 = vmatprep.subr.bf16.mxu0 %v3075_v23  ;;  %v3108_v44 = vld [vmem:[#allocation7 + $0x224] ss:$16 sps:$4 sm:$0xff]   ;;  %v3103_v45 = vld [vmem:[#allocation7 + $0x20] ss:$16 sps:$4 sm:$0xff]   ;;  %v343_v23 = vlaneseq }
  0x4f   :  { %1218 = vmatprep.subr.bf16.mxu1 %v3078_v24  ;;  %v3106_v46 = vld [vmem:[#allocation7 + $0x220] ss:$16 sps:$4 sm:$0xff]   ;;  %v3111_v47 = vld [vmem:[#allocation7 + $0x4] ss:$16 sps:$4 sm:$0xff]  }
  0x50   :  { %v3114_v48 = vld [vmem:[#allocation7 + $0x204] ss:$16 sps:$4 sm:$0xff]   ;;  %v3109_v49 = vld [vmem:[#allocation7] ss:$16 sps:$4 sm:$0xff]  }
  0x51   :  { %1176 = vmatpush1.bf16.msra.mxu0 %v3073_v25  ;;  %v3112_v50 = vld [vmem:[#allocation7 + $0x200] ss:$16 sps:$4 sm:$0xff]   ;;  %v3117_v51 = vld [vmem:[#allocation7 + $0x1e4] ss:$16 sps:$4 sm:$0xff]  }
  0x52   :  { %1219 = vmatpush1.bf16.msra.mxu1 %v3076_v26  ;;  %1177 = vmatprep.subr.bf16.mxu0 %v3081_v27  ;;  %v3120_v52 = vld [vmem:[#allocation7 + $0x3e4] ss:$16 sps:$4 sm:$0xff]   ;;  %v3115_v53 = vld [vmem:[#allocation7 + $0x1e0] ss:$16 sps:$4 sm:$0xff]  }
  0x53   :  { %1220 = vmatprep.subr.bf16.mxu1 %v3084_v28  ;;  %v3118_v54 = vld [vmem:[#allocation7 + $0x3e0] ss:$16 sps:$4 sm:$0xff]   ;;  %v3123_v55 = vld [vmem:[#allocation7 + $0x1c4] ss:$16 sps:$4 sm:$0xff]   ;;  %v344_v28 = vshrl.u32 %v343_v23, 7 }
  0x54   :  { %v3126_v56 = vld [vmem:[#allocation7 + $0x3c4] ss:$16 sps:$4 sm:$0xff]   ;;  %v3121_v57 = vld [vmem:[#allocation7 + $0x1c0] ss:$16 sps:$4 sm:$0xff]   ;;  %v3186_v23 = vld [vmem:[#allocation7 + $0x28c] ss:$16 sps:$4 sm:$0xff]  }
  0x55   :  { %1178 = vmatpush1.bf16.msra.mxu0 %v3079_v29  ;;  %v3124_v58 = vld [vmem:[#allocation7 + $0x3c0] ss:$16 sps:$4 sm:$0xff]   ;;  %v3129_v59 = vld [vmem:[#allocation7 + $0x1a4] ss:$16 sps:$4 sm:$0xff]  }
  0x56   :  { %1221 = vmatpush1.bf16.msra.mxu1 %v3082_v30  ;;  %1179 = vmatprep.subr.bf16.mxu0 %v3087_v31  ;;  %v3132_v60 = vld [vmem:[#allocation7 + $0x3a4] ss:$16 sps:$4 sm:$0xff]   ;;  %v3127_v61 = vld [vmem:[#allocation7 + $0x1a0] ss:$16 sps:$4 sm:$0xff]   ;;  %v3711_v31 = vsub.s32 1, %v344_v28 }
  0x57   :  { %1222 = vmatprep.subr.bf16.mxu1 %v3090_v32  ;;  %v3130_v62 = vld [vmem:[#allocation7 + $0x3a0] ss:$16 sps:$4 sm:$0xff]   ;;  %v3135_v63 = vld [vmem:[#allocation7 + $0x184] ss:$16 sps:$4 sm:$0xff]   ;;  %v3713_v32 = vsub.s32 3, %v344_v28 }
  0x58   :  { %v3138_v0 = vld [vmem:[#allocation7 + $0x384] ss:$16 sps:$4 sm:$0xff]   ;;  %v3133_v1 = vld [vmem:[#allocation7 + $0x180] ss:$16 sps:$4 sm:$0xff]  }
  0x59   :  { %1180 = vmatpush1.bf16.msra.mxu0 %v3085_v33  ;;  %v3136_v2 = vld [vmem:[#allocation7 + $0x380] ss:$16 sps:$4 sm:$0xff]   ;;  %v3141_v3 = vld [vmem:[#allocation7 + $0x164] ss:$16 sps:$4 sm:$0xff]  }
  0x5a   :  { %1223 = vmatpush1.bf16.msra.mxu1 %v3088_v34  ;;  %1181 = vmatprep.subr.bf16.mxu0 %v3093_v35  ;;  %v3144_v4 = vld [vmem:[#allocation7 + $0x364] ss:$16 sps:$4 sm:$0xff]   ;;  %v3139_v5 = vld [vmem:[#allocation7 + $0x160] ss:$16 sps:$4 sm:$0xff]   ;;  %v3715_v34 = vsub.s32 0, %v344_v28 }
  0x5b   :  { %1224 = vmatprep.subr.bf16.mxu1 %v3096_v36  ;;  %v3142_v6 = vld [vmem:[#allocation7 + $0x360] ss:$16 sps:$4 sm:$0xff]   ;;  %v3147_v7 = vld [vmem:[#allocation7 + $0x144] ss:$16 sps:$4 sm:$0xff]   ;;  %v3717_v36 = vsub.s32 2, %v344_v28 }
  0x5c   :  { %v3150_v8 = vld [vmem:[#allocation7 + $0x344] ss:$16 sps:$4 sm:$0xff]   ;;  %v3145_v9 = vld [vmem:[#allocation7 + $0x140] ss:$16 sps:$4 sm:$0xff]   ;;  %v3187_v28 = vld [vmem:[#allocation7 + $0x68] ss:$16 sps:$4 sm:$0xff]  }
  0x5d   :  { %1182 = vmatpush1.bf16.msra.mxu0 %v3091_v37  ;;  %v3148_v10 = vld [vmem:[#allocation7 + $0x340] ss:$16 sps:$4 sm:$0xff]   ;;  %v3153_v11 = vld [vmem:[#allocation7 + $0x124] ss:$16 sps:$4 sm:$0xff]  }
  0x5e   :  { %1225 = vmatpush1.bf16.msra.mxu1 %v3094_v38  ;;  %1183 = vmatprep.subr.bf16.mxu0 %v3099_v39  ;;  %v3156_v12 = vld [vmem:[#allocation7 + $0x324] ss:$16 sps:$4 sm:$0xff]   ;;  %v3151_v13 = vld [vmem:[#allocation7 + $0x120] ss:$16 sps:$4 sm:$0xff]  }
  0x5f   :  { %1226 = vmatprep.subr.bf16.mxu1 %v3102_v40  ;;  %v3154_v14 = vld [vmem:[#allocation7 + $0x320] ss:$16 sps:$4 sm:$0xff]   ;;  %v3159_v15 = vld [vmem:[#allocation7 + $0x104] ss:$16 sps:$4 sm:$0xff]  }
  0x60   :  { %v3162_v16 = vld [vmem:[#allocation7 + $0x304] ss:$16 sps:$4 sm:$0xff]   ;;  %v3157_v17 = vld [vmem:[#allocation7 + $0x100] ss:$16 sps:$4 sm:$0xff]  }
  0x61   :  { %1184 = vmatpush1.bf16.msra.mxu0 %v3097_v41  ;;  %v3160_v18 = vld [vmem:[#allocation7 + $0x300] ss:$16 sps:$4 sm:$0xff]  }
  0x62   :  { %1227 = vmatpush1.bf16.msra.mxu1 %v3100_v42  ;;  %1185 = vmatprep.subr.bf16.mxu0 %v3105_v43  ;;  %v341_v37 = vld [vmem:[%s3772_s4] sm:$0xf] }
  0x63   :  { %1228 = vmatprep.subr.bf16.mxu1 %v3108_v44  ;;  %v350_v41 = vrot.slane %v341_v37, %v3711_v31  ;;  %v358_v43 = vrot.slane %v341_v37, %v3713_v32 }
  0x65   :  { %1186 = vmatpush1.bf16.msra.mxu0 %v3103_v45  ;;  %v346_v45 = vrot.slane %v341_v37, %v3715_v34 }
  0x66   :  { %1229 = vmatpush1.bf16.msra.mxu1 %v3106_v46  ;;  %1187 = vmatprep.subr.bf16.mxu0 %v3111_v47  ;;  %v354_v47 = vrot.slane %v341_v37, %v3717_v36  ;;  %v3196_v37 = vld [vmem:[#allocation7 + $0x248] ss:$16 sps:$4 sm:$0xff]  }
  0x67   :  { %1230 = vmatprep.subr.bf16.mxu1 %v3114_v48 }
  0x69   :  { %1188 = vmatpush1.bf16.msra.mxu0 %v3109_v49 }
  0x6a   :  { %1231 = vmatpush1.bf16.msra.mxu1 %v3112_v50  ;;  %1189 = vmatprep.subr.bf16.mxu0 %v3117_v51 }
  0x6b   :  { %1232 = vmatprep.subr.bf16.mxu1 %v3120_v52 }
  0x6d   :  { %1190 = vmatpush2.bf16.msra.mxu0 %v3115_v53 }
  0x6e   :  { %1233 = vmatpush2.bf16.msra.mxu1 %v3118_v54  ;;  %1191 = vmatprep.subr.bf16.mxu0 %v3123_v55 }
  0x6f   :  { %1234 = vmatprep.subr.bf16.mxu1 %v3126_v56 }
  0x71   :  { %1192 = vmatpush2.bf16.msra.mxu0 %v3121_v57 }
  0x72   :  { %1235 = vmatpush2.bf16.msra.mxu1 %v3124_v58  ;;  %1193 = vmatprep.subr.bf16.mxu0 %v3129_v59 }
  0x73   :  { %1236 = vmatprep.subr.bf16.mxu1 %v3132_v60 }
  0x75   :  { %1194 = vmatpush2.bf16.msra.mxu0 %v3127_v61 }
  0x76   :  { %1237 = vmatpush2.bf16.msra.mxu1 %v3130_v62  ;;  %1195 = vmatprep.subr.bf16.mxu0 %v3135_v63 }
  0x77   :  { %1238 = vmatprep.subr.bf16.mxu1 %v3138_v0 }
  0x79   :  { %1196 = vmatpush2.bf16.msra.mxu0 %v3133_v1 }
  0x7a   :  { %1239 = vmatpush2.bf16.msra.mxu1 %v3136_v2  ;;  %1197 = vmatprep.subr.bf16.mxu0 %v3141_v3 }
  0x7b   :  { %1240 = vmatprep.subr.bf16.mxu1 %v3144_v4 }
  0x7d   :  { %1198 = vmatpush2.bf16.msra.mxu0 %v3139_v5 }
  0x7e   :  { %1241 = vmatpush2.bf16.msra.mxu1 %v3142_v6  ;;  %1199 = vmatprep.subr.bf16.mxu0 %v3147_v7 }
  0x7f   :  { %1242 = vmatprep.subr.bf16.mxu1 %v3150_v8 }
  0x81   :  { %1200 = vmatpush2.bf16.msra.mxu0 %v3145_v9 }
  0x82   :  { %1243 = vmatpush2.bf16.msra.mxu1 %v3148_v10  ;;  %1201 = vmatprep.subr.bf16.mxu0 %v3153_v11  ;;  %v3163_v10 = vld [vmem:[#allocation7 + $0xe8] ss:$16 sps:$4 sm:$0xff]  }
  0x83   :  { %1244 = vmatprep.subr.bf16.mxu1 %v3156_v12  ;;  %v3166_v11 = vld [vmem:[#allocation7 + $0x2e8] ss:$16 sps:$4 sm:$0xff]  }
  0x85   :  { %1202 = vmatpush2.bf16.msra.mxu0 %v3151_v13 }
  0x86   :  { %1245 = vmatpush2.bf16.msra.mxu1 %v3154_v14  ;;  %1203 = vmatprep.subr.bf16.mxu0 %v3159_v15  ;;  %v3171_v14 = vld [vmem:[#allocation7 + $0xcc] ss:$16 sps:$4 sm:$0xff]  }
  0x87   :  { %1246 = vmatprep.subr.bf16.mxu1 %v3162_v16  ;;  %v3174_v15 = vld [vmem:[#allocation7 + $0x2cc] ss:$16 sps:$4 sm:$0xff]   ;;  %v3169_v16 = vld [vmem:[#allocation7 + $0xc8] ss:$16 sps:$4 sm:$0xff]  }
  0x89   :  { %1204 = vmatpush2.bf16.msra.mxu0 %v3157_v17  ;;  %v3172_v17 = vld [vmem:[#allocation7 + $0x2c8] ss:$16 sps:$4 sm:$0xff]  }
  0x8a   :  { %1247 = vmatpush2.bf16.msra.mxu1 %v3160_v18  ;;  %1259 = vmatprep.subr.bf16.mxu0 %v3165_v19  ;;  %v3177_v18 = vld [vmem:[#allocation7 + $0xac] ss:$16 sps:$4 sm:$0xff]  }
  0x8b   :  { %1302 = vmatprep.subr.bf16.mxu1 %v3168_v20  ;;  %v3180_v19 = vld [vmem:[#allocation7 + $0x2ac] ss:$16 sps:$4 sm:$0xff]   ;;  %v3175_v20 = vld [vmem:[#allocation7 + $0xa8] ss:$16 sps:$4 sm:$0xff]  }
 0x104   :  { %v179_v21 = vpop.f32.mrf.mxu0 }
 0x105   :  { %v222_v22 = vpop.f32.mrf.mxu1 }
 0x106   :  { %v181_v24 = vpop.f32.mrf.mxu0 }
 0x107   :  { %v224_v25 = vpop.f32.mrf.mxu1 }
 0x108   :  { %v183_v26 = vpop.f32.mrf.mxu0 }
 0x109   :  { %v226_v27 = vpop.f32.mrf.mxu1 }
 0x10a   :  { %v185_v29 = vpop.f32.mrf.mxu0 }
 0x10b   :  { %v228_v30 = vpop.f32.mrf.mxu1 }
 0x10c   :  { %v289_v33 = vpop.f32.mrf.mxu0 }
 0x10d   :  { %v332_v35 = vpop.f32.mrf.mxu1  ;;  %v290_v44 = vadd.f32 %v289_v33, %v179_v21  ;;  %v3178_v21 = vld [vmem:[#allocation7 + $0x2a8] ss:$16 sps:$4 sm:$0xff]   ;;  %v3198_v33 = vld [vmem:[#allocation7 + $0x24c] ss:$16 sps:$4 sm:$0xff]  }
 0x10e   :  { %v291_v38 = vpop.f32.mrf.mxu0  ;;  %v333_v46 = vadd.f32 %v332_v35, %v222_v22  ;;  %v3183_v22 = vld [vmem:[#allocation7 + $0x8c] ss:$16 sps:$4 sm:$0xff]   ;;  %v3193_v35 = vld [vmem:[#allocation7 + $0x48] ss:$16 sps:$4 sm:$0xff]  }
 0x10f   :  { %v334_v39 = vpop.f32.mrf.mxu1  ;;  %v292_v40 = vadd.f32 %v291_v38, %v181_v24  ;;  %v363_v58 = vadd.f32 %v346_v45, %v290_v44  ;;  %v3181_v24 = vld [vmem:[#allocation7 + $0x88] ss:$16 sps:$4 sm:$0xff]   ;;  %v3201_v38 = vld [vmem:[#allocation7 + $0x2c] ss:$16 sps:$4 sm:$0xff]  }
 0x110   :  { %v335_v42 = vadd.f32 %v334_v39, %v224_v25  ;;  %v293_v48 = vpop.f32.mrf.mxu0  ;;  %v365_v59 = vadd.f32 %v354_v47, %v333_v46  ;;  %v3184_v25 = vld [vmem:[#allocation7 + $0x288] ss:$16 sps:$4 sm:$0xff]   ;;  %v3204_v39 = vld [vmem:[#allocation7 + $0x22c] ss:$16 sps:$4 sm:$0xff]  }
 0x111   :  { %v336_v49 = vpop.f32.mrf.mxu1  ;;  %v294_v50 = vadd.f32 %v293_v48, %v183_v26  ;;  %v364_v54 = vadd.f32 %v350_v41, %v292_v40  ;;  %v371_v6 = vmax.f32 %v363_v58, 0.0  ;;  %v3189_v26 = vld [vmem:[#allocation7 + $0x6c] ss:$16 sps:$4 sm:$0xff]   ;;  %v3199_v40 = vld [vmem:[#allocation7 + $0x28] ss:$16 sps:$4 sm:$0xff]  }
 0x112   :  { %v337_v51 = vadd.f32 %v336_v49, %v226_v27  ;;  %v295_v52 = vpop.f32.mrf.mxu0  ;;  %v366_v55 = vadd.f32 %v358_v43, %v335_v42  ;;  %v373_v7 = vmax.f32 %v365_v59, 0.0  ;;  %v3192_v27 = vld [vmem:[#allocation7 + $0x26c] ss:$16 sps:$4 sm:$0xff]   ;;  %v3205_v44 = vld [vmem:[#allocation7 + $0x8] ss:$16 sps:$4 sm:$0xff]  }
 0x113   :  { %v338_v53 = vpop.f32.mrf.mxu1  ;;  %v296_v56 = vadd.f32 %v295_v52, %v185_v29  ;;  %v367_v60 = vadd.f32 %v346_v45, %v294_v50  ;;  %v372_v2 = vmax.f32 %v364_v54, 0.0  ;;  %v3190_v29 = vld [vmem:[#allocation7 + $0x268] ss:$16 sps:$4 sm:$0xff]   ;;  %v3207_v42 = vld [vmem:[#allocation7 + $0xc] ss:$16 sps:$4 sm:$0xff]  }
 0x114   :  { %v339_v57 = vadd.f32 %v338_v53, %v228_v30  ;;  %v369_v61 = vadd.f32 %v354_v47, %v337_v51  ;;  %v374_v3 = vmax.f32 %v366_v55, 0.0  ;;  %v3195_v30 = vld [vmem:[#allocation7 + $0x4c] ss:$16 sps:$4 sm:$0xff]   ;;  %v3208_v45 = vld [vmem:[#allocation7 + $0x208] ss:$16 sps:$4 sm:$0xff]  }
 0x115   :  { %v368_v62 = vadd.f32 %v350_v41, %v296_v56  ;;  %v375_v0 = vmax.f32 %v367_v60, 0.0  ;;  %v3202_v41 = vld [vmem:[#allocation7 + $0x228] ss:$16 sps:$4 sm:$0xff]   ;;  %v3213_v46 = vld [vmem:[#allocation7 + $0x1ec] ss:$16 sps:$4 sm:$0xff]  }
 0x116   :  { %v370_v63 = vadd.f32 %v358_v43, %v339_v57  ;;  %v377_v1 = vmax.f32 %v369_v61, 0.0  ;;  %v3210_v43 = vld [vmem:[#allocation7 + $0x20c] ss:$16 sps:$4 sm:$0xff]   ;;  %v3211_v48 = vld [vmem:[#allocation7 + $0x1e8] ss:$16 sps:$4 sm:$0xff]  }
 0x117   :  { %v376_v4 = vmax.f32 %v368_v62, 0.0  ;;  %v3726_v12 = vpack.c.bf16 %v375_v0, %v371_v6  ;;  %v3216_v47 = vld [vmem:[#allocation7 + $0x3ec] ss:$16 sps:$4 sm:$0xff]   ;;  %v3214_v49 = vld [vmem:[#allocation7 + $0x3e8] ss:$16 sps:$4 sm:$0xff]  }
 0x118   :  { %v378_v5 = vmax.f32 %v370_v63, 0.0  ;;  %v3728_v13 = vpack.c.bf16 %v377_v1, %v373_v7  ;;  %v3219_v50 = vld [vmem:[#allocation7 + $0x1cc] ss:$16 sps:$4 sm:$0xff]   ;;  %v3217_v52 = vld [vmem:[#allocation7 + $0x1c8] ss:$16 sps:$4 sm:$0xff]  }
 0x119   :  { %v380_v8 = vpack.c.bf16 %v376_v4, %v372_v2  ;;  %v3222_v51 = vld [vmem:[#allocation7 + $0x3cc] ss:$16 sps:$4 sm:$0xff]   ;;  %v3220_v53 = vld [vmem:[#allocation7 + $0x3c8] ss:$16 sps:$4 sm:$0xff]  }
 0x11a   :  { %v382_v9 = vpack.c.bf16 %v378_v5, %v374_v3  ;;  %v3225_v54 = vld [vmem:[#allocation7 + $0x1ac] ss:$16 sps:$4 sm:$0xff]   ;;  %v3223_v56 = vld [vmem:[#allocation7 + $0x1a8] ss:$16 sps:$4 sm:$0xff]  }
 0x11b   :  { %1205 = vmatprep.mubr.bf16.mxu0 %v380_v8  ;;  %v3228_v55 = vld [vmem:[#allocation7 + $0x3ac] ss:$16 sps:$4 sm:$0xff]   ;;  %v3226_v57 = vld [vmem:[#allocation7 + $0x3a8] ss:$16 sps:$4 sm:$0xff]  }
 0x11c   :  { %1248 = vmatprep.mubr.bf16.mxu1 %v382_v9  ;;  %1206 = vmatmul.mubr.bf16.vlgmr.msra.gmra.mxu0 %v3726_v12  ;;  %v3231_v58 = vld [vmem:[#allocation7 + $0x18c] ss:$16 sps:$4 sm:$0xff]   ;;  %v3229_v60 = vld [vmem:[#allocation7 + $0x188] ss:$16 sps:$4 sm:$0xff]  }
 0x11d   :  { %1249 = vmatmul.mubr.bf16.vlgmr.msra.gmra.mxu1 %v3728_v13  ;;  %1260 = vmatpush1.bf16.msra.mxu0 %v3163_v10  ;;  %v3234_v59 = vld [vmem:[#allocation7 + $0x38c] ss:$16 sps:$4 sm:$0xff]   ;;  %v3232_v61 = vld [vmem:[#allocation7 + $0x388] ss:$16 sps:$4 sm:$0xff]  }
 0x11e   :  { %1303 = vmatpush1.bf16.msra.mxu1 %v3166_v11  ;;  %1291 = vmatprep.mubr.bf16.mxu0 %v380_v8  ;;  %v3237_v62 = vld [vmem:[#allocation7 + $0x16c] ss:$16 sps:$4 sm:$0xff]   ;;  %v3235_v0 = vld [vmem:[#allocation7 + $0x168] ss:$16 sps:$4 sm:$0xff]  }
 0x11f   :  { %1334 = vmatprep.mubr.bf16.mxu1 %v382_v9  ;;  %1261 = vmatprep.subr.bf16.mxu0 %v3171_v14  ;;  %v3240_v63 = vld [vmem:[#allocation7 + $0x36c] ss:$16 sps:$4 sm:$0xff]   ;;  %v3238_v1 = vld [vmem:[#allocation7 + $0x368] ss:$16 sps:$4 sm:$0xff]  }
 0x120   :  { %1304 = vmatprep.subr.bf16.mxu1 %v3174_v15  ;;  %v3243_v2 = vld [vmem:[#allocation7 + $0x14c] ss:$16 sps:$4 sm:$0xff]   ;;  %v3241_v4 = vld [vmem:[#allocation7 + $0x148] ss:$16 sps:$4 sm:$0xff]  }
 0x121   :  { %1262 = vmatpush1.bf16.msra.mxu0 %v3169_v16  ;;  %v3246_v3 = vld [vmem:[#allocation7 + $0x34c] ss:$16 sps:$4 sm:$0xff]   ;;  %v3244_v5 = vld [vmem:[#allocation7 + $0x348] ss:$16 sps:$4 sm:$0xff]   ;;  %v3261_v16 = vld [vmem:[#allocation8 + $0xe4] ss:$16 sps:$4 sm:$0xff]  }
 0x122   :  { %1305 = vmatpush1.bf16.msra.mxu1 %v3172_v17  ;;  %1263 = vmatprep.subr.bf16.mxu0 %v3177_v18  ;;  %v3249_v6 = vld [vmem:[#allocation7 + $0x12c] ss:$16 sps:$4 sm:$0xff]   ;;  %v3247_v8 = vld [vmem:[#allocation7 + $0x128] ss:$16 sps:$4 sm:$0xff]   ;;  %v3259_v17 = vld [vmem:[#allocation8 + $0xe0] ss:$16 sps:$4 sm:$0xff]  }
 0x123   :  { %1306 = vmatprep.subr.bf16.mxu1 %v3180_v19  ;;  %v3252_v7 = vld [vmem:[#allocation7 + $0x32c] ss:$16 sps:$4 sm:$0xff]   ;;  %v3250_v9 = vld [vmem:[#allocation7 + $0x328] ss:$16 sps:$4 sm:$0xff]   ;;  %v3264_v18 = vld [vmem:[#allocation8 + $0xc4] ss:$16 sps:$4 sm:$0xff]  }
 0x124   :  { %v3255_v10 = vld [vmem:[#allocation7 + $0x10c] ss:$16 sps:$4 sm:$0xff]   ;;  %v3253_v14 = vld [vmem:[#allocation7 + $0x108] ss:$16 sps:$4 sm:$0xff]   ;;  %v3262_v19 = vld [vmem:[#allocation8 + $0xc0] ss:$16 sps:$4 sm:$0xff]  }
 0x125   :  { %1264 = vmatpush1.bf16.msra.mxu0 %v3175_v20  ;;  %v3258_v11 = vld [vmem:[#allocation7 + $0x30c] ss:$16 sps:$4 sm:$0xff]   ;;  %v3256_v15 = vld [vmem:[#allocation7 + $0x308] ss:$16 sps:$4 sm:$0xff]   ;;  %v3267_v20 = vld [vmem:[#allocation8 + $0xa4] ss:$16 sps:$4 sm:$0xff]  }
 0x126   :  { %1307 = vmatpush1.bf16.msra.mxu1 %v3178_v21  ;;  %1265 = vmatprep.subr.bf16.mxu0 %v3183_v22  ;;  %v3265_v21 = vld [vmem:[#allocation8 + $0xa0] ss:$16 sps:$4 sm:$0xff]   ;;  %v3270_v22 = vld [vmem:[#allocation8 + $0x84] ss:$16 sps:$4 sm:$0xff]  }
 0x127   :  { %1308 = vmatprep.subr.bf16.mxu1 %v3186_v23  ;;  %v3268_v23 = vld [vmem:[#allocation8 + $0x80] ss:$16 sps:$4 sm:$0xff]  }
 0x129   :  { %1266 = vmatpush1.bf16.msra.mxu0 %v3181_v24  ;;  %v3273_v24 = vld [vmem:[#allocation8 + $0x64] ss:$16 sps:$4 sm:$0xff]  }
 0x12a   :  { %1309 = vmatpush1.bf16.msra.mxu1 %v3184_v25  ;;  %1267 = vmatprep.subr.bf16.mxu0 %v3189_v26  ;;  %v3271_v25 = vld [vmem:[#allocation8 + $0x60] ss:$16 sps:$4 sm:$0xff]  }
 0x12b   :  { %1310 = vmatprep.subr.bf16.mxu1 %v3192_v27  ;;  %v3307_v26 = vld [vmem:[#allocation8 + $0x2e0] ss:$16 sps:$4 sm:$0xff]   ;;  %v3309_v27 = vld [vmem:[#allocation8 + $0x2e4] ss:$16 sps:$4 sm:$0xff]  }
 0x12d   :  { %1268 = vmatpush1.bf16.msra.mxu0 %v3187_v28  ;;  %v3313_v28 = vld [vmem:[#allocation8 + $0x2c0] ss:$16 sps:$4 sm:$0xff]  }
 0x12e   :  { %1311 = vmatpush1.bf16.msra.mxu1 %v3190_v29  ;;  %1269 = vmatprep.subr.bf16.mxu0 %v3195_v30  ;;  %v3315_v29 = vld [vmem:[#allocation8 + $0x2c4] ss:$16 sps:$4 sm:$0xff]  }
 0x12f   :  { %1312 = vmatprep.subr.bf16.mxu1 %v3198_v33  ;;  %v3279_v30 = vld [vmem:[#allocation8 + $0x24] ss:$16 sps:$4 sm:$0xff]   ;;  %v3277_v33 = vld [vmem:[#allocation8 + $0x20] ss:$16 sps:$4 sm:$0xff]  }
 0x131   :  { %1270 = vmatpush1.bf16.msra.mxu0 %v3193_v35  ;;  %v3319_v35 = vld [vmem:[#allocation8 + $0x2a0] ss:$16 sps:$4 sm:$0xff]  }
 0x132   :  { %1313 = vmatpush1.bf16.msra.mxu1 %v3196_v37  ;;  %1271 = vmatprep.subr.bf16.mxu0 %v3201_v38  ;;  %v3321_v37 = vld [vmem:[#allocation8 + $0x2a4] ss:$16 sps:$4 sm:$0xff]  }
 0x133   :  { %1314 = vmatprep.subr.bf16.mxu1 %v3204_v39  ;;  %v3282_v38 = vld [vmem:[#allocation8 + $0x4] ss:$16 sps:$4 sm:$0xff]   ;;  %v3280_v39 = vld [vmem:[#allocation8] ss:$16 sps:$4 sm:$0xff]  }
 0x135   :  { %1272 = vmatpush1.bf16.msra.mxu0 %v3199_v40  ;;  %v3325_v40 = vld [vmem:[#allocation8 + $0x280] ss:$16 sps:$4 sm:$0xff]  }
 0x136   :  { %1315 = vmatpush1.bf16.msra.mxu1 %v3202_v41  ;;  %1273 = vmatprep.subr.bf16.mxu0 %v3207_v42  ;;  %v3327_v41 = vld [vmem:[#allocation8 + $0x284] ss:$16 sps:$4 sm:$0xff]  }
 0x137   :  { %1316 = vmatprep.subr.bf16.mxu1 %v3210_v43  ;;  %v3285_v42 = vld [vmem:[#allocation8 + $0x1e4] ss:$16 sps:$4 sm:$0xff]   ;;  %v3283_v43 = vld [vmem:[#allocation8 + $0x1e0] ss:$16 sps:$4 sm:$0xff]  }
 0x139   :  { %1274 = vmatpush1.bf16.msra.mxu0 %v3205_v44  ;;  %v3331_v44 = vld [vmem:[#allocation8 + $0x260] ss:$16 sps:$4 sm:$0xff]  }
 0x13a   :  { %1317 = vmatpush1.bf16.msra.mxu1 %v3208_v45  ;;  %1275 = vmatprep.subr.bf16.mxu0 %v3213_v46  ;;  %v3333_v45 = vld [vmem:[#allocation8 + $0x264] ss:$16 sps:$4 sm:$0xff]  }
 0x13b   :  { %1318 = vmatprep.subr.bf16.mxu1 %v3216_v47  ;;  %v3288_v46 = vld [vmem:[#allocation8 + $0x1c4] ss:$16 sps:$4 sm:$0xff]   ;;  %v3286_v47 = vld [vmem:[#allocation8 + $0x1c0] ss:$16 sps:$4 sm:$0xff]  }
 0x13d   :  { %1276 = vmatpush2.bf16.msra.mxu0 %v3211_v48  ;;  %v3337_v48 = vld [vmem:[#allocation8 + $0x240] ss:$16 sps:$4 sm:$0xff]  }
 0x13e   :  { %1319 = vmatpush2.bf16.msra.mxu1 %v3214_v49  ;;  %1277 = vmatprep.subr.bf16.mxu0 %v3219_v50  ;;  %v3339_v49 = vld [vmem:[#allocation8 + $0x244] ss:$16 sps:$4 sm:$0xff]  }
 0x13f   :  { %1320 = vmatprep.subr.bf16.mxu1 %v3222_v51  ;;  %v3291_v50 = vld [vmem:[#allocation8 + $0x1a4] ss:$16 sps:$4 sm:$0xff]   ;;  %v3289_v51 = vld [vmem:[#allocation8 + $0x1a0] ss:$16 sps:$4 sm:$0xff]  }
 0x141   :  { %1278 = vmatpush2.bf16.msra.mxu0 %v3217_v52  ;;  %v3343_v52 = vld [vmem:[#allocation8 + $0x220] ss:$16 sps:$4 sm:$0xff]  }
 0x142   :  { %1321 = vmatpush2.bf16.msra.mxu1 %v3220_v53  ;;  %1279 = vmatprep.subr.bf16.mxu0 %v3225_v54  ;;  %v3345_v53 = vld [vmem:[#allocation8 + $0x224] ss:$16 sps:$4 sm:$0xff]  }
 0x143   :  { %1322 = vmatprep.subr.bf16.mxu1 %v3228_v55  ;;  %v3294_v54 = vld [vmem:[#allocation8 + $0x184] ss:$16 sps:$4 sm:$0xff]   ;;  %v3292_v55 = vld [vmem:[#allocation8 + $0x180] ss:$16 sps:$4 sm:$0xff]  }
 0x145   :  { %1280 = vmatpush2.bf16.msra.mxu0 %v3223_v56  ;;  %v3349_v56 = vld [vmem:[#allocation8 + $0x200] ss:$16 sps:$4 sm:$0xff]  }
 0x146   :  { %1323 = vmatpush2.bf16.msra.mxu1 %v3226_v57  ;;  %1281 = vmatprep.subr.bf16.mxu0 %v3231_v58  ;;  %v3351_v57 = vld [vmem:[#allocation8 + $0x204] ss:$16 sps:$4 sm:$0xff]  }
 0x147   :  { %1324 = vmatprep.subr.bf16.mxu1 %v3234_v59  ;;  %v3297_v58 = vld [vmem:[#allocation8 + $0x164] ss:$16 sps:$4 sm:$0xff]   ;;  %v3295_v59 = vld [vmem:[#allocation8 + $0x160] ss:$16 sps:$4 sm:$0xff]  }
 0x149   :  { %1282 = vmatpush2.bf16.msra.mxu0 %v3229_v60  ;;  %v3355_v60 = vld [vmem:[#allocation8 + $0x3e0] ss:$16 sps:$4 sm:$0xff]  }
 0x14a   :  { %1325 = vmatpush2.bf16.msra.mxu1 %v3232_v61  ;;  %1283 = vmatprep.subr.bf16.mxu0 %v3237_v62  ;;  %v3357_v61 = vld [vmem:[#allocation8 + $0x3e4] ss:$16 sps:$4 sm:$0xff]  }
 0x14b   :  { %1326 = vmatprep.subr.bf16.mxu1 %v3240_v63  ;;  %v3300_v62 = vld [vmem:[#allocation8 + $0x144] ss:$16 sps:$4 sm:$0xff]   ;;  %v3298_v63 = vld [vmem:[#allocation8 + $0x140] ss:$16 sps:$4 sm:$0xff]  }
 0x14d   :  { %1284 = vmatpush2.bf16.msra.mxu0 %v3235_v0  ;;  %v3361_v0 = vld [vmem:[#allocation8 + $0x3c0] ss:$16 sps:$4 sm:$0xff]  }
 0x14e   :  { %1327 = vmatpush2.bf16.msra.mxu1 %v3238_v1  ;;  %1285 = vmatprep.subr.bf16.mxu0 %v3243_v2  ;;  %v3363_v1 = vld [vmem:[#allocation8 + $0x3c4] ss:$16 sps:$4 sm:$0xff]  }
 0x14f   :  { %1328 = vmatprep.subr.bf16.mxu1 %v3246_v3  ;;  %v3303_v2 = vld [vmem:[#allocation8 + $0x124] ss:$16 sps:$4 sm:$0xff]   ;;  %v3301_v3 = vld [vmem:[#allocation8 + $0x120] ss:$16 sps:$4 sm:$0xff]  }
 0x151   :  { %1286 = vmatpush2.bf16.msra.mxu0 %v3241_v4  ;;  %v3367_v4 = vld [vmem:[#allocation8 + $0x3a0] ss:$16 sps:$4 sm:$0xff]  }
 0x152   :  { %1329 = vmatpush2.bf16.msra.mxu1 %v3244_v5  ;;  %1287 = vmatprep.subr.bf16.mxu0 %v3249_v6  ;;  %v3369_v5 = vld [vmem:[#allocation8 + $0x3a4] ss:$16 sps:$4 sm:$0xff]  }
 0x153   :  { %1330 = vmatprep.subr.bf16.mxu1 %v3252_v7  ;;  %v3306_v6 = vld [vmem:[#allocation8 + $0x104] ss:$16 sps:$4 sm:$0xff]   ;;  %v3304_v7 = vld [vmem:[#allocation8 + $0x100] ss:$16 sps:$4 sm:$0xff]  }
 0x155   :  { %1288 = vmatpush2.bf16.msra.mxu0 %v3247_v8  ;;  %v3373_v8 = vld [vmem:[#allocation8 + $0x380] ss:$16 sps:$4 sm:$0xff]  }
 0x156   :  { %1331 = vmatpush2.bf16.msra.mxu1 %v3250_v9  ;;  %1289 = vmatprep.subr.bf16.mxu0 %v3255_v10  ;;  %v3375_v9 = vld [vmem:[#allocation8 + $0x384] ss:$16 sps:$4 sm:$0xff]   ;;  %v3312_v10 = vld [vmem:[#allocation8 + $0xec] ss:$16 sps:$4 sm:$0xff]  }
 0x157   :  { %1332 = vmatprep.subr.bf16.mxu1 %v3258_v11  ;;  %v3379_v11 = vld [vmem:[#allocation8 + $0x360] ss:$16 sps:$4 sm:$0xff]  }
 0x159   :  { %1290 = vmatpush2.bf16.msra.mxu0 %v3253_v14  ;;  %v3381_v14 = vld [vmem:[#allocation8 + $0x364] ss:$16 sps:$4 sm:$0xff]  }
 0x15a   :  { %1333 = vmatpush2.bf16.msra.mxu1 %v3256_v15  ;;  %2147 = vmatprep.subr.bf16.mxu0 %v3261_v16  ;;  %v3387_v15 = vld [vmem:[#allocation8 + $0x344] ss:$16 sps:$4 sm:$0xff]   ;;  %v3385_v16 = vld [vmem:[#allocation8 + $0x340] ss:$16 sps:$4 sm:$0xff]  }
 0x15b   :  { %2190 = vmatprep.subr.bf16.mxu1 %v3309_v27 }
 0x15c   :  { %1292 = vmatmul.mubr.bf16.vlgmr.msra.gmra.mxu0 %v3726_v12  ;;  %v3276_v12 = vld [vmem:[#allocation8 + $0x44] ss:$16 sps:$4 sm:$0xff]  }
 0x15d   :  { %1335 = vmatmul.mubr.bf16.vlgmr.msra.gmra.mxu1 %v3728_v13  ;;  %2148 = vmatpush1.bf16.msra.mxu0 %v3259_v17  ;;  %v3274_v13 = vld [vmem:[#allocation8 + $0x40] ss:$16 sps:$4 sm:$0xff]   ;;  %v3393_v17 = vld [vmem:[#allocation8 + $0x324] ss:$16 sps:$4 sm:$0xff]  }
 0x15e   :  { %2149 = vmatprep.subr.bf16.mxu0 %v3264_v18  ;;  %2191 = vmatpush1.bf16.msra.mxu1 %v3307_v26  ;;  %v3391_v18 = vld [vmem:[#allocation8 + $0x320] ss:$16 sps:$4 sm:$0xff]  }
 0x15f   :  { %2192 = vmatprep.subr.bf16.mxu1 %v3315_v29 }
 0x161   :  { %2150 = vmatpush1.bf16.msra.mxu0 %v3262_v19  ;;  %v3399_v19 = vld [vmem:[#allocation8 + $0x304] ss:$16 sps:$4 sm:$0xff]  }
 0x162   :  { %2151 = vmatprep.subr.bf16.mxu0 %v3267_v20  ;;  %2193 = vmatpush1.bf16.msra.mxu1 %v3313_v28  ;;  %v3397_v20 = vld [vmem:[#allocation8 + $0x300] ss:$16 sps:$4 sm:$0xff]  }
 0x163   :  { %2194 = vmatprep.subr.bf16.mxu1 %v3321_v37 }
 0x165   :  { %2152 = vmatpush1.bf16.msra.mxu0 %v3265_v21  ;;  %v3405_v21 = vld [vmem:[#allocation8 + $0x2ec] ss:$16 sps:$4 sm:$0xff]  }
 0x166   :  { %2153 = vmatprep.subr.bf16.mxu0 %v3270_v22  ;;  %2195 = vmatpush1.bf16.msra.mxu1 %v3319_v35  ;;  %v3737_v22 = vld [vmem:[%s3774_s6] sm:$0xf] }
 0x167   :  { %2196 = vmatprep.subr.bf16.mxu1 %v3327_v41 }
 0x169   :  { %2154 = vmatpush1.bf16.msra.mxu0 %v3268_v23  ;;  %v520_v23 = vrot.slane %v3737_v22, %v3711_v31 }
 0x16a   :  { %2155 = vmatprep.subr.bf16.mxu0 %v3273_v24  ;;  %2197 = vmatpush1.bf16.msra.mxu1 %v3325_v40  ;;  %v516_v24 = vrot.slane %v3737_v22, %v3715_v34 }
 0x16b   :  { %2198 = vmatprep.subr.bf16.mxu1 %v3333_v45 }
 0x16d   :  { %2156 = vmatpush1.bf16.msra.mxu0 %v3271_v25 }
 0x16e   :  { %2157 = vmatprep.subr.bf16.mxu0 %v3276_v12  ;;  %2199 = vmatpush1.bf16.msra.mxu1 %v3331_v44 }
 0x16f   :  { %2200 = vmatprep.subr.bf16.mxu1 %v3339_v49 }
 0x171   :  { %2158 = vmatpush1.bf16.msra.mxu0 %v3274_v13 }
 0x172   :  { %2159 = vmatprep.subr.bf16.mxu0 %v3279_v30  ;;  %2201 = vmatpush1.bf16.msra.mxu1 %v3337_v48  ;;  %v3310_v48 = vld [vmem:[#allocation8 + $0xe8] ss:$16 sps:$4 sm:$0xff]  }
 0x173   :  { %2202 = vmatprep.subr.bf16.mxu1 %v3345_v53  ;;  %v3322_v53 = vld [vmem:[#allocation8 + $0xa8] ss:$16 sps:$4 sm:$0xff]  }
 0x175   :  { %2160 = vmatpush1.bf16.msra.mxu0 %v3277_v33 }
 0x176   :  { %2161 = vmatprep.subr.bf16.mxu0 %v3282_v38  ;;  %2203 = vmatpush1.bf16.msra.mxu1 %v3343_v52  ;;  %v3324_v52 = vld [vmem:[#allocation8 + $0xac] ss:$16 sps:$4 sm:$0xff]  }
 0x177   :  { %2204 = vmatprep.subr.bf16.mxu1 %v3351_v57  ;;  %v3334_v57 = vld [vmem:[#allocation8 + $0x68] ss:$16 sps:$4 sm:$0xff]  }
 0x179   :  { %2162 = vmatpush1.bf16.msra.mxu0 %v3280_v39 }
 0x17a   :  { %2163 = vmatprep.subr.bf16.mxu0 %v3285_v42  ;;  %2205 = vmatpush1.bf16.msra.mxu1 %v3349_v56  ;;  %v3336_v56 = vld [vmem:[#allocation8 + $0x6c] ss:$16 sps:$4 sm:$0xff]  }
 0x17b   :  { %2206 = vmatprep.subr.bf16.mxu1 %v3357_v61  ;;  %v3346_v61 = vld [vmem:[#allocation8 + $0x28] ss:$16 sps:$4 sm:$0xff]  }
 0x17d   :  { %2164 = vmatpush2.bf16.msra.mxu0 %v3283_v43 }
 0x17e   :  { %2165 = vmatprep.subr.bf16.mxu0 %v3288_v46  ;;  %2207 = vmatpush2.bf16.msra.mxu1 %v3355_v60  ;;  %v3348_v60 = vld [vmem:[#allocation8 + $0x2c] ss:$16 sps:$4 sm:$0xff]  }
 0x17f   :  { %2208 = vmatprep.subr.bf16.mxu1 %v3363_v1  ;;  %v3358_v1 = vld [vmem:[#allocation8 + $0x1e8] ss:$16 sps:$4 sm:$0xff]  }
 0x181   :  { %2166 = vmatpush2.bf16.msra.mxu0 %v3286_v47 }
 0x182   :  { %2167 = vmatprep.subr.bf16.mxu0 %v3291_v50  ;;  %2209 = vmatpush2.bf16.msra.mxu1 %v3361_v0  ;;  %v3318_v50 = vld [vmem:[#allocation8 + $0xcc] ss:$16 sps:$4 sm:$0xff]  }
 0x183   :  { %2210 = vmatprep.subr.bf16.mxu1 %v3369_v5  ;;  %v3360_v0 = vld [vmem:[#allocation8 + $0x1ec] ss:$16 sps:$4 sm:$0xff]   ;;  %v3370_v5 = vld [vmem:[#allocation8 + $0x1a8] ss:$16 sps:$4 sm:$0xff]  }
 0x185   :  { %2168 = vmatpush2.bf16.msra.mxu0 %v3289_v51  ;;  %v3316_v51 = vld [vmem:[#allocation8 + $0xc8] ss:$16 sps:$4 sm:$0xff]  }
 0x186   :  { %2169 = vmatprep.subr.bf16.mxu0 %v3294_v54  ;;  %2211 = vmatpush2.bf16.msra.mxu1 %v3367_v4  ;;  %v3330_v54 = vld [vmem:[#allocation8 + $0x8c] ss:$16 sps:$4 sm:$0xff]  }
 0x187   :  { %2212 = vmatprep.subr.bf16.mxu1 %v3375_v9  ;;  %v3372_v4 = vld [vmem:[#allocation8 + $0x1ac] ss:$16 sps:$4 sm:$0xff]   ;;  %v3382_v9 = vld [vmem:[#allocation8 + $0x168] ss:$16 sps:$4 sm:$0xff]  }
 0x189   :  { %2170 = vmatpush2.bf16.msra.mxu0 %v3292_v55  ;;  %v3328_v55 = vld [vmem:[#allocation8 + $0x88] ss:$16 sps:$4 sm:$0xff]  }
 0x18a   :  { %2171 = vmatprep.subr.bf16.mxu0 %v3297_v58  ;;  %2213 = vmatpush2.bf16.msra.mxu1 %v3373_v8  ;;  %v3342_v58 = vld [vmem:[#allocation8 + $0x4c] ss:$16 sps:$4 sm:$0xff]  }
 0x18b   :  { %2214 = vmatprep.subr.bf16.mxu1 %v3381_v14  ;;  %v3384_v8 = vld [vmem:[#allocation8 + $0x16c] ss:$16 sps:$4 sm:$0xff]   ;;  %v524_v14 = vrot.slane %v3737_v22, %v3717_v36 }
 0x18d   :  { %2172 = vmatpush2.bf16.msra.mxu0 %v3295_v59  ;;  %v3340_v59 = vld [vmem:[#allocation8 + $0x48] ss:$16 sps:$4 sm:$0xff]  }
 0x18e   :  { %2173 = vmatprep.subr.bf16.mxu0 %v3300_v62  ;;  %2215 = vmatpush2.bf16.msra.mxu1 %v3379_v11  ;;  %v3354_v62 = vld [vmem:[#allocation8 + $0xc] ss:$16 sps:$4 sm:$0xff]   ;;  %v528_v11 = vrot.slane %v3737_v22, %v3713_v32 }
 0x18f   :  { %2216 = vmatprep.subr.bf16.mxu1 %v3387_v15 }
 0x191   :  { %2174 = vmatpush2.bf16.msra.mxu0 %v3298_v63  ;;  %v3352_v63 = vld [vmem:[#allocation8 + $0x8] ss:$16 sps:$4 sm:$0xff]  }
 0x192   :  { %2175 = vmatprep.subr.bf16.mxu0 %v3303_v2  ;;  %2217 = vmatpush2.bf16.msra.mxu1 %v3385_v16  ;;  %v3366_v2 = vld [vmem:[#allocation8 + $0x1cc] ss:$16 sps:$4 sm:$0xff]  }
 0x193   :  { %2218 = vmatprep.subr.bf16.mxu1 %v3393_v17  ;;  %v3388_v17 = vld [vmem:[#allocation8 + $0x148] ss:$16 sps:$4 sm:$0xff]  }
 0x195   :  { %2176 = vmatpush2.bf16.msra.mxu0 %v3301_v3  ;;  %v3364_v3 = vld [vmem:[#allocation8 + $0x1c8] ss:$16 sps:$4 sm:$0xff]  }
 0x196   :  { %2177 = vmatprep.subr.bf16.mxu0 %v3306_v6  ;;  %2219 = vmatpush2.bf16.msra.mxu1 %v3391_v18  ;;  %v3378_v6 = vld [vmem:[#allocation8 + $0x18c] ss:$16 sps:$4 sm:$0xff]  }
 0x197   :  { %2220 = vmatprep.subr.bf16.mxu1 %v3399_v19 }
 0x199   :  { %2178 = vmatpush2.bf16.msra.mxu0 %v3304_v7  ;;  %v3376_v7 = vld [vmem:[#allocation8 + $0x188] ss:$16 sps:$4 sm:$0xff]  }
 0x19a   :  { %2233 = vmatprep.subr.bf16.mxu0 %v3312_v10  ;;  %2221 = vmatpush2.bf16.msra.mxu1 %v3397_v20  ;;  %v3390_v10 = vld [vmem:[#allocation8 + $0x14c] ss:$16 sps:$4 sm:$0xff]  }
 0x19b   :  { %2276 = vmatprep.subr.bf16.mxu1 %v3405_v21  ;;  %v3396_v20 = vld [vmem:[#allocation8 + $0x12c] ss:$16 sps:$4 sm:$0xff]  }
 0x1dc   :  { %v1207_v25 = vpop.f32.mrf.mxu0 }
 0x1dd   :  { %v1250_v26 = vpop.f32.mrf.mxu1  ;;  %v1208_v28 = vadd.f32 %v1207_v25, %v516_v24 }
 0x1de   :  { %v1209_v27 = vpop.f32.mrf.mxu0 }
 0x1df   :  { %v1252_v12 = vpop.f32.mrf.mxu1  ;;  %v1210_v13 = vadd.f32 %v1209_v27, %v520_v23  ;;  %v1251_v40 = vadd.f32 %v1250_v26, %v1208_v28  ;;  %v3394_v27 = vld [vmem:[#allocation8 + $0x128] ss:$16 sps:$4 sm:$0xff]  }
 0x1e0   :  { %v1211_v29 = vpop.f32.mrf.mxu0 }
 0x1e1   :  { %v1254_v30 = vpop.f32.mrf.mxu1  ;;  %v1212_v33 = vadd.f32 %v1211_v29, %v516_v24  ;;  %v1253_v37 = vadd.f32 %v1252_v12, %v1210_v13  ;;  %v1345_v46 = vmax.f32 %v1251_v40, 0.0  ;;  %v3402_v13 = vld [vmem:[#allocation8 + $0x10c] ss:$16 sps:$4 sm:$0xff]  }
 0x1e2   :  { %v1213_v35 = vpop.f32.mrf.mxu0 }
 0x1e3   :  { %v1255_v38 = vadd.f32 %v1254_v30, %v1212_v33  ;;  %v1214_v39 = vadd.f32 %v1213_v35, %v520_v23  ;;  %v1256_v41 = vpop.f32.mrf.mxu1  ;;  %v1346_v44 = vmax.f32 %v1253_v37, 0.0  ;;  %v3400_v37 = vld [vmem:[#allocation8 + $0x108] ss:$16 sps:$4 sm:$0xff]  }
 0x1e5   :  { %v1257_v42 = vadd.f32 %v1256_v41, %v1214_v39  ;;  %v1349_v43 = vmax.f32 %v1255_v38, 0.0 }
 0x1e7   :  { %v1350_v45 = vmax.f32 %v1257_v42, 0.0  ;;  %v3743_v49 = vpack.c.bf16 %v1349_v43, %v1345_v46  ;;  %v3403_v43 = vld [vmem:[#allocation8 + $0x2e8] ss:$16 sps:$4 sm:$0xff]  }
 0x1e8   :  { %v3406_v46 = vld [vmem:[#allocation8 + $0x2c8] ss:$16 sps:$4 sm:$0xff]  }
 0x1e9   :  { %v1354_v47 = vpack.c.bf16 %v1350_v45, %v1346_v44  ;;  %v3408_v45 = vld [vmem:[#allocation8 + $0x2cc] ss:$16 sps:$4 sm:$0xff]  }
 0x1eb   :  { %2179 = vmatprep.mubr.bf16.mxu0 %v1354_v47 }
 0x1ec   :  { %2180 = vmatmul.mubr.bf16.vlgmr.msra.gmra.mxu0 %v3743_v49 }
 0x1ed   :  { %2234 = vmatpush1.bf16.msra.mxu0 %v3310_v48  ;;  %2265 = vmatprep.mubr.bf16.mxu0 %v1354_v47  ;;  %v3411_v47 = vld [vmem:[#allocation8 + $0x2ac] ss:$16 sps:$4 sm:$0xff]   ;;  %v3409_v48 = vld [vmem:[#allocation8 + $0x2a8] ss:$16 sps:$4 sm:$0xff]  }
 0x1ee   :  { %2235 = vmatprep.subr.bf16.mxu0 %v3318_v50  ;;  %v3414_v50 = vld [vmem:[#allocation8 + $0x28c] ss:$16 sps:$4 sm:$0xff]  }
 0x1f1   :  { %2236 = vmatpush1.bf16.msra.mxu0 %v3316_v51  ;;  %v3451_v51 = vld [vmem:[#allocation10 + $0x78] sm:$0xff]  }
 0x1f2   :  { %2237 = vmatprep.subr.bf16.mxu0 %v3324_v52  ;;  %v3452_v52 = vld [vmem:[#allocation10 + $0x38] sm:$0xff]  }
 0x1f5   :  { %2238 = vmatpush1.bf16.msra.mxu0 %v3322_v53  ;;  %v3453_v53 = vld [vmem:[#allocation10 + $0x70] sm:$0xff]  }
 0x1f6   :  { %2239 = vmatprep.subr.bf16.mxu0 %v3330_v54  ;;  %v3412_v54 = vld [vmem:[#allocation8 + $0x288] ss:$16 sps:$4 sm:$0xff]  }
 0x1f9   :  { %2240 = vmatpush1.bf16.msra.mxu0 %v3328_v55  ;;  %v3417_v55 = vld [vmem:[#allocation8 + $0x26c] ss:$16 sps:$4 sm:$0xff]  }
 0x1fa   :  { %2241 = vmatprep.subr.bf16.mxu0 %v3336_v56  ;;  %v3454_v56 = vld [vmem:[#allocation10 + $0x30] sm:$0xff]  }
 0x1fd   :  { %2242 = vmatpush1.bf16.msra.mxu0 %v3334_v57  ;;  %v3415_v57 = vld [vmem:[#allocation8 + $0x268] ss:$16 sps:$4 sm:$0xff]  }
 0x1fe   :  { %2243 = vmatprep.subr.bf16.mxu0 %v3342_v58  ;;  %v3420_v58 = vld [vmem:[#allocation8 + $0x24c] ss:$16 sps:$4 sm:$0xff]  }
 0x201   :  { %2244 = vmatpush1.bf16.msra.mxu0 %v3340_v59  ;;  %v3456_v59 = vld [vmem:[#allocation10 + $0x28] sm:$0xff]  }
 0x202   :  { %2245 = vmatprep.subr.bf16.mxu0 %v3348_v60  ;;  %v3457_v60 = vld [vmem:[#allocation10 + $0x60] sm:$0xff]  }
 0x205   :  { %2246 = vmatpush1.bf16.msra.mxu0 %v3346_v61  ;;  %v3418_v61 = vld [vmem:[#allocation8 + $0x248] ss:$16 sps:$4 sm:$0xff]  }
 0x206   :  { %2247 = vmatprep.subr.bf16.mxu0 %v3354_v62  ;;  %v3423_v62 = vld [vmem:[#allocation8 + $0x22c] ss:$16 sps:$4 sm:$0xff]  }
 0x209   :  { %2248 = vmatpush1.bf16.msra.mxu0 %v3352_v63  ;;  %v3458_v63 = vld [vmem:[#allocation10 + $0x20] sm:$0xff]  }
 0x20a   :  { %2249 = vmatprep.subr.bf16.mxu0 %v3360_v0  ;;  %v3459_v0 = vld [vmem:[#allocation10 + $0x58] sm:$0xff]  }
 0x20d   :  { %2250 = vmatpush2.bf16.msra.mxu0 %v3358_v1  ;;  %v3421_v1 = vld [vmem:[#allocation8 + $0x228] ss:$16 sps:$4 sm:$0xff]  }
 0x20e   :  { %2251 = vmatprep.subr.bf16.mxu0 %v3366_v2  ;;  %v3426_v2 = vld [vmem:[#allocation8 + $0x20c] ss:$16 sps:$4 sm:$0xff]  }
 0x211   :  { %2252 = vmatpush2.bf16.msra.mxu0 %v3364_v3  ;;  %v3460_v3 = vld [vmem:[#allocation10 + $0x18] sm:$0xff]  }
 0x212   :  { %2253 = vmatprep.subr.bf16.mxu0 %v3372_v4  ;;  %v3424_v4 = vld [vmem:[#allocation8 + $0x208] ss:$16 sps:$4 sm:$0xff]  }
 0x215   :  { %2254 = vmatpush2.bf16.msra.mxu0 %v3370_v5  ;;  %v3429_v5 = vld [vmem:[#allocation8 + $0x3ec] ss:$16 sps:$4 sm:$0xff]  }
 0x216   :  { %2255 = vmatprep.subr.bf16.mxu0 %v3378_v6  ;;  %v3427_v6 = vld [vmem:[#allocation8 + $0x3e8] ss:$16 sps:$4 sm:$0xff]  }
 0x219   :  { %2256 = vmatpush2.bf16.msra.mxu0 %v3376_v7  ;;  %v3432_v7 = vld [vmem:[#allocation8 + $0x3cc] ss:$16 sps:$4 sm:$0xff]  }
 0x21a   :  { %2257 = vmatprep.subr.bf16.mxu0 %v3384_v8  ;;  %v3430_v8 = vld [vmem:[#allocation8 + $0x3c8] ss:$16 sps:$4 sm:$0xff]  }
 0x21c   :  { %v1293_v15 = vpop.f32.mrf.mxu0 }
 0x21d   :  { %v1336_v16 = vpop.f32.mrf.mxu1  ;;  %2258 = vmatpush2.bf16.msra.mxu0 %v3382_v9  ;;  %v1294_v23 = vadd.f32 %v1293_v15, %v524_v14  ;;  %v3435_v9 = vld [vmem:[#allocation8 + $0x3ac] ss:$16 sps:$4 sm:$0xff]  }
 0x21e   :  { %v1295_v18 = vpop.f32.mrf.mxu0  ;;  %2259 = vmatprep.subr.bf16.mxu0 %v3390_v10  ;;  %v3433_v10 = vld [vmem:[#allocation8 + $0x3a8] ss:$16 sps:$4 sm:$0xff]   ;;  %v3441_v15 = vld [vmem:[#allocation8 + $0x36c] ss:$16 sps:$4 sm:$0xff]  }
 0x21f   :  { %v1338_v19 = vpop.f32.mrf.mxu1  ;;  %v1296_v21 = vadd.f32 %v1295_v18, %v528_v11  ;;  %v1337_v30 = vadd.f32 %v1336_v16, %v1294_v23  ;;  %v3439_v16 = vld [vmem:[#allocation8 + $0x368] ss:$16 sps:$4 sm:$0xff]  }
 0x220   :  { %v1297_v24 = vpop.f32.mrf.mxu0  ;;  %v3442_v18 = vld [vmem:[#allocation8 + $0x348] ss:$16 sps:$4 sm:$0xff]  }
 0x221   :  { %v1340_v25 = vpop.f32.mrf.mxu1  ;;  %v1298_v26 = vadd.f32 %v1297_v24, %v524_v14  ;;  %2260 = vmatpush2.bf16.msra.mxu0 %v3388_v17  ;;  %v1339_v28 = vadd.f32 %v1338_v19, %v1296_v21  ;;  %v1347_v41 = vmax.f32 %v1337_v30, 0.0  ;;  %v3436_v14 = vld [vmem:[#allocation8 + $0x388] ss:$16 sps:$4 sm:$0xff]   ;;  %v3444_v17 = vld [vmem:[#allocation8 + $0x34c] ss:$16 sps:$4 sm:$0xff]   ;;  %v3461_v24 = vld [vmem:[#allocation10 + $0x50] sm:$0xff]  }
 0x222   :  { %v1299_v12 = vpop.f32.mrf.mxu0  ;;  %2261 = vmatprep.subr.bf16.mxu0 %v3396_v20  ;;  %v3447_v19 = vld [vmem:[#allocation8 + $0x32c] ss:$16 sps:$4 sm:$0xff]   ;;  %v3445_v20 = vld [vmem:[#allocation8 + $0x328] ss:$16 sps:$4 sm:$0xff]   ;;  %v3470_v30 = vld [vmem:[#allocation10 + $0xb0] sm:$0xff]  }
 0x223   :  { %v1341_v22 = vadd.f32 %v1340_v25, %v1298_v26  ;;  %v1300_v29 = vadd.f32 %v1299_v12, %v528_v11  ;;  %v1342_v33 = vpop.f32.mrf.mxu1  ;;  %v1348_v39 = vmax.f32 %v1339_v28, 0.0  ;;  %v3438_v11 = vld [vmem:[#allocation8 + $0x38c] ss:$16 sps:$4 sm:$0xff]   ;;  %v3448_v23 = vld [vmem:[#allocation8 + $0x308] ss:$16 sps:$4 sm:$0xff]   ;;  %v3462_v25 = vld [vmem:[#allocation10 + $0x10] sm:$0xff]  }
 0x224   :  { %v3450_v21 = vld [vmem:[#allocation8 + $0x30c] ss:$16 sps:$4 sm:$0xff]   ;;  %v3465_v12 = vld [vmem:[#allocation10 + $0x40] sm:$0xff]  }
 0x225   :  { %v1343_v35 = vadd.f32 %v1342_v33, %v1300_v29  ;;  %2262 = vmatpush2.bf16.msra.mxu0 %v3394_v27  ;;  %v1351_v38 = vmax.f32 %v1341_v22, 0.0  ;;  %v3463_v26 = vld [vmem:[#allocation10 + $0x48] sm:$0xff]   ;;  %v3467_v28 = vld [vmem:[#allocation10 + $0xf8] sm:$0xff]   ;;  %v3469_v29 = vld [vmem:[#allocation10 + $0xf0] sm:$0xff]  }
 0x226   :  { %2263 = vmatprep.subr.bf16.mxu0 %v3402_v13  ;;  %v3464_v27 = vld [vmem:[#allocation10 + $0x8] sm:$0xff]   ;;  %v3466_v13 = vld [vmem:[#allocation10] sm:$0xff]   ;;  %v3468_v22 = vld [vmem:[#allocation10 + $0xb8] sm:$0xff]  }
 0x227   :  { %v1352_v40 = vmax.f32 %v1343_v35, 0.0  ;;  %v3750_v44 = vpack.c.bf16 %v1351_v38, %v1347_v41  ;;  %v3471_v33 = vld [vmem:[#allocation10 + $0xe8] sm:$0xff]   ;;  %v3474_v38 = vld [vmem:[#allocation10 + $0xa0] sm:$0xff]   ;;  %v3477_v41 = vld [vmem:[#allocation10 + $0xd0] sm:$0xff]  }
 0x228   :  { %v3472_v35 = vld [vmem:[#allocation10 + $0xa8] sm:$0xff]  }
 0x229   :  { %v1356_v42 = vpack.c.bf16 %v1352_v40, %v1348_v39  ;;  %2264 = vmatpush2.bf16.msra.mxu0 %v3400_v37  ;;  %v3473_v37 = vld [vmem:[#allocation10 + $0xe0] sm:$0xff]   ;;  %v3475_v39 = vld [vmem:[#allocation10 + $0xd8] sm:$0xff]  }
 0x22a   :  { %3000 = vmatprep.subr.bf16.mxu0 %v3451_v51  ;;  %v3476_v40 = vld [vmem:[#allocation10 + $0x98] sm:$0xff]  }
 0x22b   :  { %2222 = vmatprep.mubr.bf16.mxu1 %v1356_v42 }
 0x22c   :  { %2223 = vmatmul.mubr.bf16.vlgmr.msra.gmra.mxu1 %v3750_v44  ;;  %2266 = vmatmul.mubr.bf16.vlgmr.msra.gmra.mxu0 %v3743_v49  ;;  %v3455_v49 = vld [vmem:[#allocation10 + $0x68] sm:$0xff]  }
 0x22d   :  { %2277 = vmatpush1.bf16.msra.mxu1 %v3403_v43  ;;  %2308 = vmatprep.mubr.bf16.mxu1 %v1356_v42  ;;  %v3478_v42 = vld [vmem:[#allocation10 + $0x90] sm:$0xff]   ;;  %v3479_v43 = vld [vmem:[#allocation10 + $0xc8] sm:$0xff]  }
 0x22e   :  { %2278 = vmatprep.subr.bf16.mxu1 %v3408_v45  ;;  %3001 = vmatpush3.bf16.msra.mxu0 %v3452_v52  ;;  %v3481_v45 = vld [vmem:[#allocation10 + $0xc0] sm:$0xff]  }
 0x22f   :  { %3002 = vmatprep.subr.bf16.mxu0 %v3453_v53 }
 0x231   :  { %2279 = vmatpush1.bf16.msra.mxu1 %v3406_v46  ;;  %v3482_v46 = vld [vmem:[#allocation10 + $0x80] sm:$0xff]  }
 0x232   :  { %2280 = vmatprep.subr.bf16.mxu1 %v3411_v47  ;;  %3003 = vmatpush3.bf16.msra.mxu0 %v3454_v56 }
 0x233   :  { %3004 = vmatprep.subr.bf16.mxu0 %v3455_v49 }
 0x235   :  { %2281 = vmatpush1.bf16.msra.mxu1 %v3409_v48 }
 0x236   :  { %2282 = vmatprep.subr.bf16.mxu1 %v3414_v50  ;;  %3005 = vmatpush3.bf16.msra.mxu0 %v3456_v59  ;;  %v1485_v50 = vld [vmem:[%s3776_s8] sm:$0xf] }
 0x237   :  { %3006 = vmatprep.subr.bf16.mxu0 %v3457_v60  ;;  %v1494_v52 = vrot.slane %v1485_v50, %v3711_v31  ;;  %v1490_v53 = vrot.slane %v1485_v50, %v3715_v34 }
 0x239   :  { %2283 = vmatpush1.bf16.msra.mxu1 %v3412_v54 }
 0x23a   :  { %2284 = vmatprep.subr.bf16.mxu1 %v3417_v55  ;;  %3007 = vmatpush3.bf16.msra.mxu0 %v3458_v63 }
 0x23b   :  { %3008 = vmatprep.subr.bf16.mxu0 %v3459_v0 }
 0x23d   :  { %2285 = vmatpush1.bf16.msra.mxu1 %v3415_v57 }
 0x23e   :  { %2286 = vmatprep.subr.bf16.mxu1 %v3420_v58  ;;  %3009 = vmatpush3.bf16.msra.mxu0 %v3460_v3 }
 0x23f   :  { %3010 = vmatprep.subr.bf16.mxu0 %v3461_v24 }
 0x241   :  { %2287 = vmatpush1.bf16.msra.mxu1 %v3418_v61 }
 0x242   :  { %2288 = vmatprep.subr.bf16.mxu1 %v3423_v62  ;;  %3011 = vmatpush3.bf16.msra.mxu0 %v3462_v25 }
 0x243   :  { %3012 = vmatprep.subr.bf16.mxu0 %v3463_v26 }
 0x245   :  { %2289 = vmatpush1.bf16.msra.mxu1 %v3421_v1 }
 0x246   :  { %2290 = vmatprep.subr.bf16.mxu1 %v3426_v2  ;;  %3013 = vmatpush3.bf16.msra.mxu0 %v3464_v27 }
 0x247   :  { %3014 = vmatprep.subr.bf16.mxu0 %v3465_v12 }
 0x249   :  { %2291 = vmatpush1.bf16.msra.mxu1 %v3424_v4 }
 0x24a   :  { %2292 = vmatprep.subr.bf16.mxu1 %v3429_v5  ;;  %3015 = vmatpush3.bf16.msra.mxu0 %v3466_v13 }
 0x24d   :  { %2293 = vmatpush2.bf16.msra.mxu1 %v3427_v6 }
 0x24e   :  { %2294 = vmatprep.subr.bf16.mxu1 %v3432_v7 }
 0x251   :  { %2295 = vmatpush2.bf16.msra.mxu1 %v3430_v8 }
 0x252   :  { %2296 = vmatprep.subr.bf16.mxu1 %v3435_v9  ;;  %v1502_v9 = vrot.slane %v1485_v50, %v3713_v32 }
 0x255   :  { %2297 = vmatpush2.bf16.msra.mxu1 %v3433_v10  ;;  %v1498_v10 = vrot.slane %v1485_v50, %v3717_v36 }
 0x256   :  { %2298 = vmatprep.subr.bf16.mxu1 %v3438_v11 }
 0x259   :  { %2299 = vmatpush2.bf16.msra.mxu1 %v3436_v14 }
 0x25a   :  { %2300 = vmatprep.subr.bf16.mxu1 %v3441_v15 }
 0x25d   :  { %2301 = vmatpush2.bf16.msra.mxu1 %v3439_v16 }
 0x25e   :  { %2302 = vmatprep.subr.bf16.mxu1 %v3444_v17 }
 0x261   :  { %2303 = vmatpush2.bf16.msra.mxu1 %v3442_v18 }
 0x262   :  { %2304 = vmatprep.subr.bf16.mxu1 %v3447_v19 }
 0x265   :  { %2305 = vmatpush2.bf16.msra.mxu1 %v3445_v20 }
 0x266   :  { %2306 = vmatprep.subr.bf16.mxu1 %v3450_v21 }
 0x269   :  { %2307 = vmatpush2.bf16.msra.mxu1 %v3448_v23 }
 0x26a   :  { %3022 = vmatprep.subr.bf16.mxu1 %v3467_v28 }
 0x26c   :  { %2309 = vmatmul.mubr.bf16.vlgmr.msra.gmra.mxu1 %v3750_v44  ;;  %v3480_v44 = vld [vmem:[#allocation10 + $0x88] sm:$0xff]  }
 0x26d   :  { %3023 = vmatpush3.bf16.msra.mxu1 %v3468_v22 }
 0x26e   :  { %3024 = vmatprep.subr.bf16.mxu1 %v3469_v29 }
 0x271   :  { %3025 = vmatpush3.bf16.msra.mxu1 %v3470_v30 }
 0x272   :  { %3026 = vmatprep.subr.bf16.mxu1 %v3471_v33 }
 0x275   :  { %3027 = vmatpush3.bf16.msra.mxu1 %v3472_v35  ;;  %v2967_v35 = vld [vmem:[%s3778_s10] ss:$0 sm:$0xff] }
 0x276   :  { %3028 = vmatprep.subr.bf16.mxu1 %v3473_v37 }
 0x279   :  { %3029 = vmatpush3.bf16.msra.mxu1 %v3474_v38 }
 0x27a   :  { %3030 = vmatprep.subr.bf16.mxu1 %v3475_v39 }
 0x27d   :  { %3031 = vmatpush3.bf16.msra.mxu1 %v3476_v40 }
 0x27e   :  { %3032 = vmatprep.subr.bf16.mxu1 %v3477_v41 }
 0x281   :  { %3033 = vmatpush3.bf16.msra.mxu1 %v3478_v42 }
 0x282   :  { %3034 = vmatprep.subr.bf16.mxu1 %v3479_v43 }
 0x285   :  { %3035 = vmatpush3.bf16.msra.mxu1 %v3480_v44 }
 0x286   :  { %3036 = vmatprep.subr.bf16.mxu1 %v3481_v45 }
 0x289   :  { %3037 = vmatpush3.bf16.msra.mxu1 %v3482_v46 }
 0x2ac   :  { %v2181_v47 = vpop.f32.mrf.mxu0 }
 0x2ad   :  { %v2182_v58 = vadd.f32 %v2181_v47, %v1490_v53 }
 0x2ae   :  { %v2183_v48 = vpop.f32.mrf.mxu0 }
 0x2af   :  { %v2184_v49 = vadd.f32 %v2183_v48, %v1494_v52 }
 0x2b0   :  { %v2185_v51 = vpop.f32.mrf.mxu0 }
 0x2b1   :  { %v2186_v57 = vadd.f32 %v2185_v51, %v1490_v53 }
 0x2b2   :  { %v2187_v55 = vpop.f32.mrf.mxu0 }
 0x2b3   :  { %v2188_v60 = vadd.f32 %v2187_v55, %v1494_v52 }
 0x2ec   :  { %v2224_v54 = vpop.f32.mrf.mxu1  ;;  %v2267_v34 = vpop.f32.mrf.mxu0 }
 0x2ed   :  { %v2225_v63 = vadd.f32 %v2224_v54, %v2182_v58  ;;  %v2268_v18 = vadd.f32 %v2267_v34, %v1498_v10 }
 0x2ee   :  { %v2226_v56 = vpop.f32.mrf.mxu1  ;;  %v2269_v7 = vpop.f32.mrf.mxu0 }
 0x2ef   :  { %v2227_v61 = vadd.f32 %v2226_v56, %v2184_v49  ;;  %v2319_v5 = vmax.f32 %v2225_v63, 0.0  ;;  %v2270_v16 = vadd.f32 %v2269_v7, %v1502_v9 }
 0x2f0   :  { %v2228_v59 = vpop.f32.mrf.mxu1  ;;  %v2271_v8 = vpop.f32.mrf.mxu0 }
 0x2f1   :  { %v2229_v62 = vadd.f32 %v2228_v59, %v2186_v57  ;;  %v2320_v3 = vmax.f32 %v2227_v61, 0.0  ;;  %v2272_v17 = vadd.f32 %v2271_v8, %v1498_v10 }
 0x2f2   :  { %v2230_v0 = vpop.f32.mrf.mxu1  ;;  %v2273_v14 = vpop.f32.mrf.mxu0 }
 0x2f3   :  { %v2231_v1 = vadd.f32 %v2230_v0, %v2188_v60  ;;  %v2323_v2 = vmax.f32 %v2229_v62, 0.0  ;;  %v2274_v20 = vadd.f32 %v2273_v14, %v1502_v9 }
 0x2f5   :  { %v2324_v4 = vmax.f32 %v2231_v1, 0.0  ;;  %v2327_v6 = vpack.c.bf16 %v2323_v2, %v2319_v5 }
 0x2f7   :  { %v2328_v31 = vpack.c.bf16 %v2324_v4, %v2320_v3 }
 0x2f9   :  { %2626 = vmatprep.mubr.bf16.mxu0 %v2328_v31 }
 0x2fa   :  { %2627 = vmatmul.mubr.bf16.vlgmr.msra.gmra.mxu0 %v2327_v6 }
 0x32c   :  { %v2310_v11 = vpop.f32.mrf.mxu1 }
 0x32d   :  { %v2311_v24 = vadd.f32 %v2310_v11, %v2268_v18 }
 0x32e   :  { %v2312_v15 = vpop.f32.mrf.mxu1 }
 0x32f   :  { %v2313_v21 = vadd.f32 %v2312_v15, %v2270_v16  ;;  %v2321_v28 = vmax.f32 %v2311_v24, 0.0 }
 0x330   :  { %v2314_v19 = vpop.f32.mrf.mxu1 }
 0x331   :  { %v2315_v23 = vadd.f32 %v2314_v19, %v2272_v17  ;;  %v2322_v12 = vmax.f32 %v2313_v21, 0.0 }
 0x332   :  { %v2316_v25 = vpop.f32.mrf.mxu1 }
 0x333   :  { %v2317_v26 = vadd.f32 %v2316_v25, %v2274_v20  ;;  %v2325_v27 = vmax.f32 %v2315_v23, 0.0 }
 0x335   :  { %v2326_v13 = vmax.f32 %v2317_v26, 0.0  ;;  %v2329_v22 = vpack.c.bf16 %v2325_v27, %v2321_v28 }
 0x337   :  { %v2330_v32 = vpack.c.bf16 %v2326_v13, %v2322_v12 }
 0x339   :  { %2667 = vmatprep.mubr.bf16.mxu1 %v2330_v32 }
 0x33a   :  { %2668 = vmatmul.mubr.bf16.vlgmr.msra.gmra.mxu1 %v2329_v22 }
 0x3ba   :  { %v3016_v36 = vpop.f32.mrf.mxu0 }
 0x3bc   :  { %v3017_v29 = vpop.f32.mrf.mxu0 }
 0x3bd   :  { %v3018_v33 = vadd.f32 %v3017_v29, %v3016_v36 }
 0x3be   :  { %v3019_v30 = vpop.f32.mrf.mxu0 }
 0x3bf   :  { %v2629_v40 = vadd.f32 %v3018_v33, %v2967_v35 }
 0x3c0   :  { %v3020_v37 = vpop.f32.mrf.mxu0 }
 0x3c1   :  { %v3021_v41 = vadd.f32 %v3020_v37, %v3019_v30 }
 0x3c3   :  { %v2632_v46 = vadd.f32 %v3021_v41, %v2967_v35 }
 0x3fa   :  { %v3038_v38 = vpop.f32.mrf.mxu1 }
 0x3fc   :  { %v3039_v39 = vpop.f32.mrf.mxu1 }
 0x3fd   :  { %v3040_v42 = vadd.f32 %v3039_v39, %v3038_v38 }
 0x3fe   :  { %v3041_v43 = vpop.f32.mrf.mxu1 }
 0x3ff   :  { %v2670_v44 = vadd.f32 %v3040_v42, %v2629_v40 }
 0x400   :  { %v3042_v45 = vpop.f32.mrf.mxu1 }
 0x401   :  { %2676 = vst [vmem:[#allocation11] sm:$0xff] %v2670_v44  ;;  %v3043_v47 = vadd.f32 %v3042_v45, %v3041_v43 }
 0x403   :  { %v2673_v48 = vadd.f32 %v3043_v47, %v2632_v46 }
 0x405   :  { %2677 = vst [vmem:[#allocation11 + $0x8] sm:$0xff] %v2673_v48 }
 0x406   :  { %3594 = shalt.err (!%p3591_p1)
}
 0x407   :  { %s3622_s10 = smov 128   ;;  %s3623_s16 = smov 8  }
 0x408   :  { %2689 = dma.vmem_to_hbm [thread:$0]  %s2684_s14, 256, %s3779_s11, [#allocation4], %s3622_s10, %s3622_s10, %s3623_s16  }
 0x409   :  { %3609 = dma.done.wait [#allocation4], 256  }
 0x40a   :  { %3610 = vsyncadd [#allocation4], 4294967040 }
 0x40b   :  { %2693 = vsyncpa [#allocation3], 1 }
 0x40c   :  { %2694 = vsyncpa [#allocation6], 1 }
 0x40d   :  { %2695 = vsyncpa [#allocation9], 1 }
 0x40e   :  { %2696 = vsyncpa [#allocation4], 1 }

</bundles_post_ra>
